<compile_context>
chip_gen: v7x
topology: tpu7x:2x2x1
jax: 0.10.0
libtpu: 0.0.40
codegen_flags: <defaults>
</compile_context>

<pallas_src>
import functools

import jax
import jax.numpy as jnp
from jax import lax
from jax.experimental import pallas as pl
from jax.experimental.pallas import tpu as pltpu


def self_attention_kernel(x_ref, w_ref, b_ref, gamma_ref, o_ref, *, cqp):
    # x_ref: (1, C, N) block for the current batch element.
    x = x_ref[0]                                                       # (C, N)

    # Fused q|k|v projection: one MXU matmul + one bias add.
    qkv = jnp.dot(w_ref[...], x,
                  preferred_element_type=jnp.float32) + b_ref[...]     # (2*cqp+C, N)

    q = qkv[:cqp]             # (cqp, N)   rows >= Cq are zero
    k = qkv[cqp:2 * cqp]      # (cqp, N)   rows >= Cq are zero
    v = qkv[2 * cqp:]         # (C, N)

    # attn[i, j] = sum_c q[c, i] * k[c, j]  -- no explicit transpose.
    attn = lax.dot_general(q, k, (((0,), (0,)), ((), ())),
                           preferred_element_type=jnp.float32)          # (N, N)

    # Softmax over j (last axis), all math in f32.
    attn = attn - jnp.max(attn, axis=-1, keepdims=True)
    e = jnp.exp(attn)
    p = e * pl.reciprocal(jnp.sum(e, axis=-1, keepdims=True), approx=True)

    # out[c, i] = sum_j v[c, j] * p[i, j]   (== value @ attn^T in torch terms)
    attn_out = lax.dot_general(v, p, (((1,), (1,)), ((), ())),
                               preferred_element_type=jnp.float32)      # (C, N)

    o_ref[0] = gamma_ref[0] * attn_out + x


def _fuse_qkv(wq, bq, wk, bk, wv, bv):
    """Concatenate q/k/v conv weights into one sublane-aligned matmul weight.

    Conv weights are given as (C_out, C_in) matrices (1x1 convs).  q and k are
    padded with zero rows up to Cqp (next multiple of 8) so slices of the fused
    output land on sublane boundaries.
    """
    cq, c = wq.shape
    cqp = ((cq + 7) // 8) * 8
    rows = 2 * cqp + c
    w_cat = jnp.zeros((rows, c), jnp.float32)
    w_cat = w_cat.at[:cq].set(wq)
    w_cat = w_cat.at[cqp:cqp + cq].set(wk)
    w_cat = w_cat.at[2 * cqp:].set(wv)
    b_cat = jnp.zeros((rows, 1), jnp.float32)
    b_cat = b_cat.at[:cq, 0].set(bq)
    b_cat = b_cat.at[cqp:cqp + cq, 0].set(bk)
    b_cat = b_cat.at[2 * cqp:, 0].set(bv)
    return w_cat, b_cat, cqp


def self_attention_pallas(x_nchw, wq, bq, wk, bk, wv, bv, gamma):
    """x_nchw: (B, C, W, H) float32. Returns (B, C, W, H)."""
    B, C, W, H = x_nchw.shape
    N = W * H

    w_cat, b_cat, cqp = _fuse_qkv(wq, bq, wk, bk, wv, bv)
    rows = 2 * cqp + C

    # Free reshape of contiguous NCHW memory -- no transpose.
    x_bcn = x_nchw.reshape(B, C, N)

    kernel = functools.partial(self_attention_kernel, cqp=cqp)

    out_bcn = pl.pallas_call(
        kernel,
        out_shape=jax.ShapeDtypeStruct((B, C, N), jnp.float32),
        grid_spec=pltpu.PrefetchScalarGridSpec(
            num_scalar_prefetch=0,
            grid=(B,),
            in_specs=[
                pl.BlockSpec((1, C, N), lambda b: (b, 0, 0)),          # x
                pl.BlockSpec((rows, C), lambda b: (0, 0)),             # fused W
                pl.BlockSpec((rows, 1), lambda b: (0, 0)),             # fused bias
                pl.BlockSpec(memory_space=pltpu.MemorySpace.SMEM),     # gamma (1,)
            ],
            out_specs=pl.BlockSpec((1, C, N), lambda b: (b, 0, 0)),
        ),
        compiler_params=pltpu.CompilerParams(
            dimension_semantics=("parallel",)),
    )(x_bcn, w_cat, b_cat, gamma)

    return out_bcn.reshape(B, C, W, H)


def self_attention_ref(x_nchw, wq, bq, wk, bk, wv, bv, gamma):
    """Pure-JAX reference mirroring the PyTorch forward."""
    B, C, W, H = x_nchw.shape
    N = W * H
    x = x_nchw.reshape(B, C, N)                                        # (B, C, N)
    q = jnp.einsum("oc,bcn->bon", wq, x) + bq[None, :, None]           # (B, Cq, N)
    k = jnp.einsum("oc,bcn->bon", wk, x) + bk[None, :, None]           # (B, Cq, N)
    v = jnp.einsum("oc,bcn->bon", wv, x) + bv[None, :, None]           # (B, C, N)
    attn = jnp.einsum("bci,bcj->bij", q, k)                            # (B, N, N)
    attn = jax.nn.softmax(attn, axis=-1)
    out = jnp.einsum("bcj,bij->bci", v, attn)                          # (B, C, N)
    out = gamma[0] * out + x
    return out.reshape(B, C, W, H)


if __name__ == "__main__":
    key = jax.random.PRNGKey(0)
    kx, kq, kk, kv, kbq, kbk, kbv = jax.random.split(key, 7)

    B, C, W, H = 2, 32, 16, 16       # in_channels=32 -> query/key channels = 4
    Cq = C // 8

    x = jax.random.normal(kx, (B, C, W, H), dtype=jnp.float32)

    # Conv2d 1x1 weights stored directly as (C_out, C_in) matmul weights.
    wq = jax.random.normal(kq, (Cq, C), dtype=jnp.float32) * 0.1
    wk = jax.random.normal(kk, (Cq, C), dtype=jnp.float32) * 0.1
    wv = jax.random.normal(kv, (C, C), dtype=jnp.float32) * 0.1
    bq = jax.random.normal(kbq, (Cq,), dtype=jnp.float32) * 0.1
    bk = jax.random.normal(kbk, (Cq,), dtype=jnp.float32) * 0.1
    bv = jax.random.normal(kbv, (C,), dtype=jnp.float32) * 0.1
    # Module __init__ sets gamma = 0 (output == x); use nonzero so the
    # attention path is actually exercised.
    gamma = jnp.array([0.5], dtype=jnp.float32)

    out = self_attention_pallas(x, wq, bq, wk, bk, wv, bv, gamma)
    out = jax.block_until_ready(out)

    ref = self_attention_ref(x, wq, bq, wk, bk, wv, bv, gamma)
    assert out.shape == (B, C, W, H)
    assert jnp.allclose(out, ref, rtol=2e-3, atol=2e-3), "mismatch vs reference"

    print("KERNEL_OK")
</pallas_src>

<mosaic_0001>
module attributes {stable_mosaic.version = 11 : i64} {
  func.func @self_attention_kernel(%arg0: i32, %arg1: memref<1x32x256xf32, #tpu.memory_space<vmem>>, %arg2: memref<48x32xf32, #tpu.memory_space<vmem>>, %arg3: memref<48x1xf32, #tpu.memory_space<vmem>>, %arg4: memref<1xf32, #tpu.memory_space<smem>>, %arg5: memref<1x32x256xf32, #tpu.memory_space<vmem>>) attributes {dimension_semantics = [#tpu.dimension_semantics<parallel>], iteration_bounds = array<i64: 2>, scalar_prefetch = 0 : i64, scratch_operands = 0 : i64, tpu.core_type = #tpu.core_type<tc>, window_params = [{transform_indices = @transform_0, window_bounds = array<i64: 1, 32, 256>}, {pipeline_mode = #tpu.pipeline_mode<synchronous>, transform_indices = @transform_1, window_bounds = array<i64: 48, 32>}, {pipeline_mode = #tpu.pipeline_mode<synchronous>, transform_indices = @transform_2, window_bounds = array<i64: 48, 1>}, {transform_indices = @transform_3, window_bounds = array<i64: 1>}, {transform_indices = @transform_4, window_bounds = array<i64: 1, 32, 256>}]} {
    %c0 = arith.constant 0 : index
    %c0_0 = arith.constant 0 : index
    %c0_1 = arith.constant 0 : index
    %0 = vector.load %arg1[%c0, %c0_0, %c0_1] : memref<1x32x256xf32, #tpu.memory_space<vmem>>, vector<1x32x256xf32>
    %1 = vector.shape_cast %0 : vector<1x32x256xf32> to vector<32x256xf32>
    %c0_2 = arith.constant 0 : index
    %c0_3 = arith.constant 0 : index
    %2 = vector.load %arg2[%c0_2, %c0_3] : memref<48x32xf32, #tpu.memory_space<vmem>>, vector<48x32xf32>
    %cst = arith.constant dense<0.000000e+00> : vector<48x256xf32>
    %3 = tpu.matmul %2, %1, %cst {dimension_numbers = #tpu.dot_dimension_numbers<[1], [0], [0], [1], [0, 0, 1, 1], [], []>} : vector<48x32xf32>, vector<32x256xf32>, vector<48x256xf32> -> vector<48x256xf32>
    %c0_4 = arith.constant 0 : index
    %c0_5 = arith.constant 0 : index
    %4 = vector.load %arg3[%c0_4, %c0_5] : memref<48x1xf32, #tpu.memory_space<vmem>>, vector<48x1xf32>
    %5 = vector.broadcast %4 : vector<48x1xf32> to vector<48x256xf32>
    %6 = arith.addf %3, %5 : vector<48x256xf32>
    %7 = vector.extract_strided_slice %6 {offsets = [0, 0], sizes = [8, 256], strides = [1, 1]} : vector<48x256xf32> to vector<8x256xf32>
    %8 = vector.extract_strided_slice %6 {offsets = [8, 0], sizes = [8, 256], strides = [1, 1]} : vector<48x256xf32> to vector<8x256xf32>
    %9 = vector.extract_strided_slice %6 {offsets = [16, 0], sizes = [32, 256], strides = [1, 1]} : vector<48x256xf32> to vector<32x256xf32>
    %cst_6 = arith.constant dense<0.000000e+00> : vector<256x256xf32>
    %10 = tpu.matmul %7, %8, %cst_6 {dimension_numbers = #tpu.dot_dimension_numbers<[0], [0], [1], [1], [0, 1, 1, 1], [], []>} : vector<8x256xf32>, vector<8x256xf32>, vector<256x256xf32> -> vector<256x256xf32>
    %cst_7 = arith.constant dense<0xFF800000> : vector<256xf32>
    %11 = vector.multi_reduction <maximumf>, %10, %cst_7 [1] : vector<256x256xf32> to vector<256xf32>
    %12 = vector.shape_cast %11 : vector<256xf32> to vector<256x1xf32>
    %13 = vector.broadcast %12 : vector<256x1xf32> to vector<256x256xf32>
    %14 = arith.subf %10, %13 : vector<256x256xf32>
    %15 = math.exp %14 : vector<256x256xf32>
    %cst_8 = arith.constant dense<0.000000e+00> : vector<256xf32>
    %16 = vector.multi_reduction <add>, %15, %cst_8 [1] : vector<256x256xf32> to vector<256xf32>
    %17 = vector.shape_cast %16 : vector<256xf32> to vector<256x1xf32>
    %18 = tpu.reciprocal %17 {approx = true} : vector<256x1xf32> -> vector<256x1xf32>
    %19 = vector.broadcast %18 : vector<256x1xf32> to vector<256x256xf32>
    %20 = arith.mulf %15, %19 : vector<256x256xf32>
    %cst_9 = arith.constant dense<0.000000e+00> : vector<32x256xf32>
    %21 = tpu.matmul %9, %20, %cst_9 {dimension_numbers = #tpu.dot_dimension_numbers<[1], [1], [0], [0], [0, 0, 1, 0], [], []>} : vector<32x256xf32>, vector<256x256xf32>, vector<32x256xf32> -> vector<32x256xf32>
    %c0_10 = arith.constant 0 : index
    %22 = memref.load %arg4[%c0_10] : memref<1xf32, #tpu.memory_space<smem>>
    %23 = vector.broadcast %22 : f32 to vector<32x256xf32>
    %24 = arith.mulf %23, %21 : vector<32x256xf32>
    %25 = arith.addf %24, %1 : vector<32x256xf32>
    %c0_11 = arith.constant 0 : index
    %c0_12 = arith.constant 0 : index
    %c0_13 = arith.constant 0 : index
    %26 = vector.load %arg5[%c0_11, %c0_12, %c0_13] : memref<1x32x256xf32, #tpu.memory_space<vmem>>, vector<1x32x256xf32>
    %27 = vector.shape_cast %26 : vector<1x32x256xf32> to vector<32x256xf32>
    %28 = vector.shape_cast %25 : vector<32x256xf32> to vector<1x32x256xf32>
    tpu.vector_store %arg5[%c0_11, %c0_12, %c0_13], %28 {strides = array<i32>} : memref<1x32x256xf32, #tpu.memory_space<vmem>>, vector<1x32x256xf32>,
    return
  }
  func.func @transform_0(%arg0: i32) -> (i32, i32, i32) {
    %c0_i32 = arith.constant 0 : i32
    %c0_i32_0 = arith.constant 0 : i32
    %c0_i32_1 = arith.constant 0 : i32
    return %arg0, %c0_i32, %c0_i32_0 : i32, i32, i32
  }
  func.func @transform_1(%arg0: i32) -> (i32, i32) {
    %c0_i32 = arith.constant 0 : i32
    %c0_i32_0 = arith.constant 0 : i32
    %c0_i32_1 = arith.constant 0 : i32
    return %c0_i32, %c0_i32_0 : i32, i32
  }
  func.func @transform_2(%arg0: i32) -> (i32, i32) {
    %c0_i32 = arith.constant 0 : i32
    %c0_i32_0 = arith.constant 0 : i32
    %c0_i32_1 = arith.constant 0 : i32
    return %c0_i32, %c0_i32_0 : i32, i32
  }
  func.func @transform_3(%arg0: i32) -> i32 {
    %c0_i32 = arith.constant 0 : i32
    %c0_i32_0 = arith.constant 0 : i32
    return %c0_i32 : i32
  }
  func.func @transform_4(%arg0: i32) -> (i32, i32, i32) {
    %c0_i32 = arith.constant 0 : i32
    %c0_i32_0 = arith.constant 0 : i32
    %c0_i32_1 = arith.constant 0 : i32
    return %arg0, %c0_i32, %c0_i32_0 : i32, i32, i32
  }
}

</mosaic_0001>

<bundles_post_ra>
// kernel: tpu_custom_call.1
= control target key start
LH: loop header
LB: loop body
LE: loop exit
PB: predicated region body
PF: predicated region fallthrough
CT: control target
= control target key end

     0   :  { %s2733_s0 = inlined_call_operand.vmem [shape: f32[2,32,256], index: 0, kind: input, shape index: {}]   ;;  %s2734_s1 = inlined_call_operand.vmem [shape: f32[48,32], index: 1, kind: input, shape index: {}]   ;;  %s2735_s2 = inlined_call_operand.vmem [shape: f32[48,1], index: 2, kind: input, shape index: {}]   ;;  %s2736_s3 = inlined_call_operand.<no memory space> [shape: f32[1], index: 3, kind: input, shape index: {}]   ;;  %s2737_s4 = inlined_call_operand.hbm [shape: f32[2,32,256], index: 4, kind: output, shape index: {}]  }
   0x1   :  { %9 = sst [smem:[#allocation2]] %s2736_s3 }
   0x2   :  { %10 = vsyncpa [#allocation4], 0 }
   0x3   :  { %12 = vsyncpa [#allocation4 + $0x1], 0  ;;  %s1954_s17 = smov 0   ;;  %s1956_s18 = smov 0  }
   0x4   :  { %s1958_s19 = smov 0   ;;  %s1960_s20 = smov 0  }
   0x5 LB: > { %s1975_s3 = sadd.s32 4294967295, %s1919_s20   ;;  %s1456_s21 = sadd.s32 4294967294, %s1919_s20   ;;  %s1919_s20 = sphi %s1960_s20, %s2829_s20   ;;  %s1915_s19 = sphi %s1958_s19, %s2828_s19   ;;  %s1911_s18 = sphi %s1956_s18, %s2827_s18   ;;  %s1907_s17 = sphi %s1954_s17, %s2826_s17  }
   0x6   : > { %s1979_s22 = sadd.s32 1, %s1919_s20   ;;  %s114_s23 = sadd.s32 1, %s1915_s19 }
   0x7   : > { %s111_s24 = ssub.s32 %s1919_s20, %s1979_s22  ;;  %p124_p0 = scmp.ne.s32.totalorder %s1915_s19, %s1911_s18 }
   0x8   : > { %p112_p1 = scmp.eq.s32.totalorder %s111_s24, 0  ;;  %p125_p2 = scmp.eq.s32.totalorder %s1975_s3, 1 }
   0x9   : > { %p130_p3 = scmp.ne.s32.totalorder %s1911_s18, %s1907_s17  ;;  %p131_p4 = scmp.eq.s32.totalorder %s1456_s21, 1 }
   0xa   : > { %s1990_s25 = scalar_select %p112_p1, %s1915_s19, %s114_s23  }
   0xb   : > { %p1992_p5 = por %p125_p2, %p124_p0  ;;  %p1996_p6 = por %p131_p4, %p130_p3 }
   0xc   : > { %p1459_p7 = scmp.ge.s32.totalorder %s1919_s20, 1  ;;  %p166_p8 = scmp.lt.s32.totalorder %s1919_s20, 3 }
   0xe   : > { %p167_p9 = pnand %p1459_p7, %p166_p8 }
  0x10   : > { %170 = sbr.rel (%p167_p9) target bundleno = 1355 (0x54b), region = 36 }
  0x17   : > { %p192_p10 = scmp.lt.s32.totalorder %s1975_s3, 1  ;;  %v2738_v0 = vmov 0.0   ;;  %v1922_v1 = vmov 0   ;;  %v211_v2 = vld [vmem:[%s2735_s2] sm:$0xff]  ;;  %v212_v3 = vld [vmem:[%s2735_s2 + $0x8] sm:$0xff]  ;;  %vm247_vm0 = vcmask 261120  }
  0x18   : > { %330 = vmatprep.mubr.f32.mxu0 %v2738_v0  ;;  %1655 = vset.pattern.permute.xlu0 %v1922_v1  ;;  %v205_v16 = vld [vmem:[%s2734_s1] sm:$0xff]  ;;  %v206_v17 = vld [vmem:[%s2734_s1 + $0x8] sm:$0xff]  ;;  %vm431_vm1 = vcmask 64512   ;;  %s1354_s14 = sld [smem:[#allocation2]]  ;;  %s189_s15 = sand.u32 1, %s1911_s18  }
  0x19   : > { %s193_s30 = scalar_select %p192_p10, %s1975_s3, 1  ;;  %219 = vperm.xlu0 %1655, %v211_v2   ;;  %592 = vmatprep.mubr.f32.mxu1 %v2738_v0 }
  0x1a   : > { %s1460_s16 = sshll.u32 %s189_s15, 6  ;;  %s1507_s23 = sshll.u32 %s1975_s3, 10 }
  0x1b   : > { %s1506_s7 = sshll.u32 %s193_s30, 6  ;;  %s191_s21 = scalar_lea.vmem [#allocation3], %s1460_s16 }
  0x1c   : > { %s2015_s10 = scalar_lea.vmem %s2733_s0, %s1506_s7  ;;  %s1394_s24 = sshll.u32 %s191_s21, 4  ;;  %s2687_s24 = int_to_ptr.vmem [resolvable:$true] %s1394_s24 }
  0x1d   : > { %v198_v4 = vld [vmem:[%s2015_s10 + $0x8] sm:$0xff]  ;;  %v200_v5 = vld [vmem:[%s2015_s10 + $0x18] sm:$0xff]  ;;  %v197_v6 = vld [vmem:[%s2015_s10] sm:$0xff]  ;;  %224 = vperm.xlu0 %1655, %v212_v3   ;;  %s2685_s30 = scalar_lea.hbm %s2737_s4, %s1507_s23  ;;  %s2692_s3 = scalar_lea.sflag [#allocation4], %s189_s15 }
  0x1e   : > { %v1508_v7 = vpack.c.bf16 %v200_v5, %v198_v4  ;;  %v199_v8 = vld [vmem:[%s2015_s10 + $0x10] sm:$0xff]  ;;  %v202_v9 = vld [vmem:[%s2015_s10 + $0x28] sm:$0xff]  ;;  %v204_v10 = vld [vmem:[%s2015_s10 + $0x38] sm:$0xff]  ;;  %s1857_s5 = scalar_lea.vmem %s2687_s24, 1024  ;;  %s1923_s6 = smov [#allocation3]  }
  0x1f   : > { %v1510_v11 = vpack.c.bf16 %v199_v8, %v197_v6  ;;  %v1512_v12 = vpack.c.bf16 %v204_v10, %v202_v9  ;;  %v201_v13 = vld [vmem:[%s2015_s10 + $0x20] sm:$0xff]  ;;  %v203_v14 = vld [vmem:[%s2015_s10 + $0x30] sm:$0xff]  ;;  %p1858_p11 = scmp.ne.s32.totalorder %s2687_s24, %s1857_s5  ;;  %s1861_s7 = sshll.u32 %s1923_s6, 4  ;;  %s1862_s7 = int_to_ptr.vmem [resolvable:$false] %s1861_s7 }
  0x20   : > { %1509 = vmatprep.subr.bf16.mxu0 %v1508_v7  ;;  %v1514_v15 = vpack.c.bf16 %v203_v14, %v201_v13  ;;  %s1863_s8 = scalar_lea.vmem %s1862_s7, 2048  ;;  %p1864_p0 = scmp.lt.s32.totalorder %s2687_s24, %s1862_s7 }
  0x21   : > { %1511 = vmatpush1.bf16.msra.mxu0 %v1510_v11  ;;  %p1859_p12 = pnand %p1858_p11, %p1992_p5  ;;  %p1865_p1 = scmp.lt.s32.totalorder %s1863_s8, %s1857_s5 }
  0x22   : > { %1513 = vmatprep.subr.bf16.mxu0 %v1512_v12 }
  0x23   : > { %p1860_p13 = pneg %p1859_p12  ;;  %p1866_p2 = por %p1865_p1, %p1864_p0 }
  0x25   : > { %1515 = vmatpush1.bf16.msra.mxu0 %v1514_v15  ;;  %p1867_p3 = pnand %p1866_p2, %p1860_p13 }
  0x28   : > { %1463 = vmatmul.mubr.msk.f32.vlgmr.msra.gmra.mrb[0].mxu0 %vm247_vm0, %v205_v16 }
  0x29   : > { %336 = vmatprep.mubr.f32.mxu0 %v2738_v0 }
  0x2c   : > { %1464 = vmatmul.mubr.msk.f32.gmra.mrb[2].mxu0 %vm247_vm0, %v206_v17 }
  0x2d   : > { %342 = vmatprep.mubr.f32.mxu0 %v2738_v0 }
  0x98   : > { %v220_v18 = vpop.permute.xlu0 %219 }
  0x9c   : > { %v225_v23 = vpop.permute.xlu0 %224 }
  0xfb   : > { %v332_v19 = vpop.f32.mrb[0].mxu0 }
  0xfc   : > { %v334_v20 = vpop.f32.mrb[1].mxu0  ;;  %v333_v21 = vadd.f32 %v332_v19, %v220_v18 }
  0xfd   : > { %v335_v27 = vadd.f32 %v334_v20, %v220_v18 }
  0xfe   : > { %367 = vxpose.xlu1.b32.start.end [1/1] (short) %v333_v21, 128 }
  0xff   : > { %v338_v22 = vpop.f32.mrb[2].mxu0 }
 0x100   : > { %v340_v24 = vpop.f32.mrb[3].mxu0  ;;  %v339_v26 = vadd.f32 %v338_v22, %v225_v23 }
 0x101   : > { %v341_v25 = vadd.f32 %v340_v24, %v225_v23 }
 0x103   : > { %528 = vmatprep.subr.mxu1 %v341_v25 }
 0x104   : > { %529 = vmatpush1.msra.mxu1 %v339_v26 }
 0x13b   : > { %399 = vxpose.xlu1.b32.start.end [1/1] (short) %v335_v27, 128 }
 0x159   : > { %1656 = vset.pattern.permute.xlu1 %v1922_v1 }
 0x17e   : > { %v383_v28 = vpop.trf.xlu1 }
 0x17f   : > { %1469 = vmatmul.mubr.msk.f32.vlgmr.msra.gmra.mrb[0].mxu1 %vm431_vm1, %v383_v28 }
 0x180   : > { %598 = vmatprep.mubr.f32.mxu1 %v2738_v0 }
 0x182   : > { %v384_v29 = vpop.trf.xlu1 }
 0x183   : > { %1470 = vmatmul.mubr.msk.f32.gmra.mrb[2].mxu1 %vm431_vm1, %v384_v29 }
 0x184   : > { %604 = vmatprep.mubr.f32.mxu1 %v2738_v0 }
 0x186   : > { %v385_v30 = vpop.trf.xlu1 }
 0x187   : > { %1471 = vmatmul.mubr.msk.f32.gmra.mrb[4].mxu1 %vm431_vm1, %v385_v30 }
 0x188   : > { %610 = vmatprep.mubr.f32.mxu1 %v2738_v0 }
 0x18a   : > { %v386_v31 = vpop.trf.xlu1 }
 0x18b   : > { %1472 = vmatmul.mubr.msk.f32.gmra.mrb[6].mxu1 %vm431_vm1, %v386_v31 }
 0x18c   : > { %616 = vmatprep.mubr.f32.mxu1 %v2738_v0 }
 0x18e   : > { %v387_v32 = vpop.trf.xlu1 }
 0x18f   : > { %1473 = vmatmul.mubr.msk.f32.gmra.mrb[8].mxu1 %vm431_vm1, %v387_v32 }
 0x190   : > { %622 = vmatprep.mubr.f32.mxu1 %v2738_v0 }
 0x192   : > { %v388_v33 = vpop.trf.xlu1 }
 0x193   : > { %1474 = vmatmul.mubr.msk.f32.gmra.mrb[10].mxu1 %vm431_vm1, %v388_v33 }
 0x194   : > { %628 = vmatprep.mubr.f32.mxu1 %v2738_v0 }
 0x196   : > { %v389_v34 = vpop.trf.xlu1 }
 0x197   : > { %1475 = vmatmul.mubr.msk.f32.gmra.mrb[12].mxu1 %vm431_vm1, %v389_v34 }
 0x198   : > { %634 = vmatprep.mubr.f32.mxu1 %v2738_v0 }
 0x19a   : > { %v390_v35 = vpop.trf.xlu1 }
 0x19b   : > { %1476 = vmatmul.mubr.msk.f32.gmra.mrb[14].mxu1 %vm431_vm1, %v390_v35 }
 0x19c   : > { %640 = vmatprep.mubr.f32.mxu1 %v2738_v0 }
 0x19e   : > { %v391_v36 = vpop.trf.xlu1 }
 0x19f   : > { %1477 = vmatmul.mubr.msk.f32.gmra.mrb[16].mxu1 %vm431_vm1, %v391_v36 }
 0x1a0   : > { %646 = vmatprep.mubr.f32.mxu1 %v2738_v0 }
 0x1a2   : > { %v392_v37 = vpop.trf.xlu1 }
 0x1a3   : > { %1478 = vmatmul.mubr.msk.f32.gmra.mrb[18].mxu1 %vm431_vm1, %v392_v37 }
 0x1a4   : > { %652 = vmatprep.mubr.f32.mxu1 %v2738_v0 }
 0x1a6   : > { %v393_v38 = vpop.trf.xlu1 }
 0x1a7   : > { %1479 = vmatmul.mubr.msk.f32.gmra.mrb[20].mxu1 %vm431_vm1, %v393_v38 }
 0x1a8   : > { %658 = vmatprep.mubr.f32.mxu1 %v2738_v0 }
 0x1aa   : > { %v394_v39 = vpop.trf.xlu1 }
 0x1ab   : > { %1480 = vmatmul.mubr.msk.f32.gmra.mrb[22].mxu1 %vm431_vm1, %v394_v39 }
 0x1ac   : > { %664 = vmatprep.mubr.f32.mxu1 %v2738_v0 }
 0x1ae   : > { %v395_v40 = vpop.trf.xlu1 }
 0x1af   : > { %1481 = vmatmul.mubr.msk.f32.gmra.mrb[24].mxu1 %vm431_vm1, %v395_v40 }
 0x1b0   : > { %670 = vmatprep.mubr.f32.mxu1 %v2738_v0 }
 0x1b2   : > { %v396_v41 = vpop.trf.xlu1 }
 0x1b3   : > { %1482 = vmatmul.mubr.msk.f32.gmra.mrb[26].mxu1 %vm431_vm1, %v396_v41 }
 0x1b4   : > { %676 = vmatprep.mubr.f32.mxu1 %v2738_v0 }
 0x1b6   : > { %v397_v42 = vpop.trf.xlu1 }
 0x1b7   : > { %1483 = vmatmul.mubr.msk.f32.gmra.mrb[28].mxu1 %vm431_vm1, %v397_v42 }
 0x1b8   : > { %682 = vmatprep.mubr.f32.mxu1 %v2738_v0 }
 0x1ba   : > { %v398_v43 = vpop.trf.xlu1 }
 0x1bb   : > { %1484 = vmatmul.mubr.msk.f32.gmra.mrb[30].mxu1 %vm431_vm1, %v398_v43 }
 0x1bc   : > { %688 = vmatprep.mubr.f32.mxu1 %v2738_v0 }
 0x1be   : > { %v415_v44 = vpop.trf.xlu1 }
 0x1bf   : > { %1485 = vmatmul.mubr.msk.f32.gmra.mrb[32].mxu1 %vm431_vm1, %v415_v44 }
 0x1c0   : > { %694 = vmatprep.mubr.f32.mxu1 %v2738_v0 }
 0x1c2   : > { %v416_v45 = vpop.trf.xlu1 }
 0x1c3   : > { %1486 = vmatmul.mubr.msk.f32.gmra.mrb[34].mxu1 %vm431_vm1, %v416_v45 }
 0x1c4   : > { %700 = vmatprep.mubr.f32.mxu1 %v2738_v0 }
 0x1c6   : > { %v417_v46 = vpop.trf.xlu1 }
 0x1c7   : > { %1487 = vmatmul.mubr.msk.f32.gmra.mrb[36].mxu1 %vm431_vm1, %v417_v46 }
 0x1c8   : > { %706 = vmatprep.mubr.f32.mxu1 %v2738_v0 }
 0x1ca   : > { %v418_v47 = vpop.trf.xlu1 }
 0x1cb   : > { %1488 = vmatmul.mubr.msk.f32.gmra.mrb[38].mxu1 %vm431_vm1, %v418_v47 }
 0x1cc   : > { %712 = vmatprep.mubr.f32.mxu1 %v2738_v0 }
 0x1ce   : > { %v419_v48 = vpop.trf.xlu1 }
 0x1cf   : > { %1489 = vmatmul.mubr.msk.f32.gmra.mrb[40].mxu1 %vm431_vm1, %v419_v48 }
 0x1d0   : > { %718 = vmatprep.mubr.f32.mxu1 %v2738_v0 }
 0x1d2   : > { %v420_v49 = vpop.trf.xlu1 }
 0x1d3   : > { %1490 = vmatmul.mubr.msk.f32.gmra.mrb[42].mxu1 %vm431_vm1, %v420_v49 }
 0x1d4   : > { %724 = vmatprep.mubr.f32.mxu1 %v2738_v0 }
 0x1d6   : > { %v421_v50 = vpop.trf.xlu1 }
 0x1d7   : > { %1491 = vmatmul.mubr.msk.f32.gmra.mrb[44].mxu1 %vm431_vm1, %v421_v50 }
 0x1d8   : > { %730 = vmatprep.mubr.f32.mxu1 %v2738_v0 }
 0x1da   : > { %v422_v51 = vpop.trf.xlu1 }
 0x1db   : > { %1492 = vmatmul.mubr.msk.f32.gmra.mrb[46].mxu1 %vm431_vm1, %v422_v51 }
 0x1dc   : > { %736 = vmatprep.mubr.f32.mxu1 %v2738_v0 }
 0x1de   : > { %v423_v52 = vpop.trf.xlu1 }
 0x1df   : > { %1493 = vmatmul.mubr.msk.f32.gmra.mrb[48].mxu1 %vm431_vm1, %v423_v52 }
 0x1e0   : > { %742 = vmatprep.mubr.f32.mxu1 %v2738_v0 }
 0x1e2   : > { %v424_v53 = vpop.trf.xlu1 }
 0x1e3   : > { %1494 = vmatmul.mubr.msk.f32.gmra.mrb[50].mxu1 %vm431_vm1, %v424_v53 }
 0x1e4   : > { %748 = vmatprep.mubr.f32.mxu1 %v2738_v0 }
 0x1e6   : > { %v425_v54 = vpop.trf.xlu1 }
 0x1e7   : > { %1495 = vmatmul.mubr.msk.f32.gmra.mrb[52].mxu1 %vm431_vm1, %v425_v54 }
 0x1e8   : > { %754 = vmatprep.mubr.f32.mxu1 %v2738_v0 }
 0x1ea   : > { %v426_v55 = vpop.trf.xlu1 }
 0x1eb   : > { %1496 = vmatmul.mubr.msk.f32.gmra.mrb[54].mxu1 %vm431_vm1, %v426_v55 }
 0x1ec   : > { %760 = vmatprep.mubr.f32.mxu1 %v2738_v0 }
 0x1ee   : > { %v427_v56 = vpop.trf.xlu1 }
 0x1ef   : > { %1497 = vmatmul.mubr.msk.f32.gmra.mrb[56].mxu1 %vm431_vm1, %v427_v56 }
 0x1f0   : > { %766 = vmatprep.mubr.f32.mxu1 %v2738_v0 }
 0x1f2   : > { %v428_v57 = vpop.trf.xlu1 }
 0x1f3   : > { %1498 = vmatmul.mubr.msk.f32.gmra.mrb[58].mxu1 %vm431_vm1, %v428_v57 }
 0x1f4   : > { %772 = vmatprep.mubr.f32.mxu1 %v2738_v0 }
 0x1f6   : > { %v429_v58 = vpop.trf.xlu1 }
 0x1f7   : > { %1499 = vmatmul.mubr.msk.f32.gmra.mrb[60].mxu1 %vm431_vm1, %v429_v58 }
 0x1f8   : > { %778 = vmatprep.mubr.f32.mxu1 %v2738_v0 }
 0x1fa   : > { %v430_v59 = vpop.trf.xlu1 }
 0x1fb   : > { %1500 = vmatmul.mubr.msk.f32.gmra.mrb[62].mxu1 %vm431_vm1, %v430_v59 }
 0x252   : > { %v2098_v60 = vpop.f32.mrb[0].mxu1 }
 0x253   : > { %v2100_v61 = vpop.f32.mrb[1].mxu1 }
 0x254   : > { %v785_v62 = vmax.f32 %v2098_v60, %v2100_v61 }
 0x256   : > { %786 = vmax.xlane.f32.xlu0 %v785_v62  ;;  %v2104_v63 = vpop.f32.mrb[2].mxu1 }
 0x257   : > { %v2106_v1 = vpop.f32.mrb[3].mxu1 }
 0x258   : > { %v788_v2 = vmax.f32 %v2104_v63, %v2106_v1 }
 0x25a   : > { %789 = vmax.xlane.f32.xlu0 %v788_v2  ;;  %v2110_v3 = vpop.f32.mrb[4].mxu1 }
 0x25b   : > { %v2112_v4 = vpop.f32.mrb[5].mxu1 }
 0x25c   : > { %v791_v5 = vmax.f32 %v2110_v3, %v2112_v4 }
 0x25e   : > { %792 = vmax.xlane.f32.xlu0 %v791_v5  ;;  %v2116_v6 = vpop.f32.mrb[6].mxu1 }
 0x25f   : > { %v2118_v7 = vpop.f32.mrb[7].mxu1 }
 0x260   : > { %v794_v8 = vmax.f32 %v2116_v6, %v2118_v7 }
 0x262   : > { %795 = vmax.xlane.f32.xlu0 %v794_v8  ;;  %v2122_v9 = vpop.f32.mrb[8].mxu1 }
 0x263   : > { %v2124_v10 = vpop.f32.mrb[9].mxu1 }
 0x264   : > { %v797_v11 = vmax.f32 %v2122_v9, %v2124_v10 }
 0x266   : > { %798 = vmax.xlane.f32.xlu0 %v797_v11  ;;  %v2128_v12 = vpop.f32.mrb[10].mxu1 }
 0x267   : > { %v2130_v13 = vpop.f32.mrb[11].mxu1 }
 0x268   : > { %v800_v14 = vmax.f32 %v2128_v12, %v2130_v13 }
 0x26a   : > { %801 = vmax.xlane.f32.xlu0 %v800_v14  ;;  %v2134_v15 = vpop.f32.mrb[12].mxu1 }
 0x26b   : > { %v2136_v16 = vpop.f32.mrb[13].mxu1 }
 0x26c   : > { %v803_v17 = vmax.f32 %v2134_v15, %v2136_v16 }
 0x26e   : > { %804 = vmax.xlane.f32.xlu0 %v803_v17  ;;  %v2140_v18 = vpop.f32.mrb[14].mxu1 }
 0x26f   : > { %v2142_v19 = vpop.f32.mrb[15].mxu1 }
 0x270   : > { %v806_v20 = vmax.f32 %v2140_v18, %v2142_v19 }
 0x272   : > { %807 = vmax.xlane.f32.xlu0 %v806_v20  ;;  %v2146_v21 = vpop.f32.mrb[16].mxu1 }
 0x273   : > { %v2148_v22 = vpop.f32.mrb[17].mxu1 }
 0x274   : > { %v809_v23 = vmax.f32 %v2146_v21, %v2148_v22 }
 0x276   : > { %810 = vmax.xlane.f32.xlu1 %v809_v23  ;;  %v2152_v24 = vpop.f32.mrb[18].mxu1 }
 0x277   : > { %v2154_v25 = vpop.f32.mrb[19].mxu1 }
 0x278   : > { %v812_v26 = vmax.f32 %v2152_v24, %v2154_v25 }
 0x27a   : > { %813 = vmax.xlane.f32.xlu0 %v812_v26  ;;  %v2158_v27 = vpop.f32.mrb[20].mxu1 }
 0x27b   : > { %v2160_v28 = vpop.f32.mrb[21].mxu1 }
 0x27c   : > { %v815_v29 = vmax.f32 %v2158_v27, %v2160_v28 }
 0x27e   : > { %816 = vmax.xlane.f32.xlu0 %v815_v29  ;;  %v2164_v30 = vpop.f32.mrb[22].mxu1 }
 0x27f   : > { %v2166_v31 = vpop.f32.mrb[23].mxu1 }
 0x280   : > { %v818_v32 = vmax.f32 %v2164_v30, %v2166_v31 }
 0x282   : > { %819 = vmax.xlane.f32.xlu0 %v818_v32  ;;  %v2170_v33 = vpop.f32.mrb[24].mxu1 }
 0x283   : > { %v2172_v34 = vpop.f32.mrb[25].mxu1 }
 0x284   : > { %v821_v35 = vmax.f32 %v2170_v33, %v2172_v34 }
 0x286   : > { %822 = vmax.xlane.f32.xlu0 %v821_v35  ;;  %v2176_v36 = vpop.f32.mrb[26].mxu1 }
 0x287   : > { %v2178_v37 = vpop.f32.mrb[27].mxu1 }
 0x288   : > { %v824_v38 = vmax.f32 %v2176_v36, %v2178_v37 }
 0x28a   : > { %825 = vmax.xlane.f32.xlu0 %v824_v38  ;;  %v2182_v39 = vpop.f32.mrb[28].mxu1 }
 0x28b   : > { %v2184_v40 = vpop.f32.mrb[29].mxu1 }
 0x28c   : > { %v827_v41 = vmax.f32 %v2182_v39, %v2184_v40 }
 0x28e   : > { %828 = vmax.xlane.f32.xlu0 %v827_v41  ;;  %v2188_v42 = vpop.f32.mrb[30].mxu1  ;;  %v207_v41 = vld [vmem:[%s2734_s1 + $0x10] sm:$0xff] }
 0x28f   : > { %v2190_v43 = vpop.f32.mrb[31].mxu1  ;;  %1465 = vmatmul.mubr.msk.f32.gmra.mrb[4].mxu0 %vm247_vm0, %v207_v41 }
 0x290   : > { %v830_v44 = vmax.f32 %v2188_v42, %v2190_v43  ;;  %348 = vmatprep.mubr.f32.mxu0 %v2738_v0 }
 0x292   : > { %831 = vmax.xlane.f32.xlu0 %v830_v44  ;;  %v2194_v45 = vpop.f32.mrb[32].mxu1 }
 0x293   : > { %v2196_v46 = vpop.f32.mrb[33].mxu1 }
 0x294   : > { %v833_v47 = vmax.f32 %v2194_v45, %v2196_v46 }
 0x296   : > { %834 = vmax.xlane.f32.xlu0 %v833_v47  ;;  %v2200_v48 = vpop.f32.mrb[34].mxu1 }
 0x297   : > { %v2202_v49 = vpop.f32.mrb[35].mxu1 }
 0x298   : > { %v836_v50 = vmax.f32 %v2200_v48, %v2202_v49 }
 0x29a   : > { %837 = vmax.xlane.f32.xlu0 %v836_v50  ;;  %v2206_v51 = vpop.f32.mrb[36].mxu1 }
 0x29b   : > { %v2208_v52 = vpop.f32.mrb[37].mxu1 }
 0x29c   : > { %v839_v53 = vmax.f32 %v2206_v51, %v2208_v52 }
 0x29e   : > { %840 = vmax.xlane.f32.xlu0 %v839_v53  ;;  %v2212_v54 = vpop.f32.mrb[38].mxu1  ;;  %v208_v53 = vld [vmem:[%s2734_s1 + $0x18] sm:$0xff] }
 0x29f   : > { %v2214_v55 = vpop.f32.mrb[39].mxu1  ;;  %1466 = vmatmul.mubr.msk.f32.gmra.mrb[6].mxu0 %vm247_vm0, %v208_v53 }
 0x2a0   : > { %v842_v56 = vmax.f32 %v2212_v54, %v2214_v55  ;;  %354 = vmatprep.mubr.f32.mxu0 %v2738_v0 }
 0x2a2   : > { %843 = vmax.xlane.f32.xlu0 %v842_v56  ;;  %v2218_v57 = vpop.f32.mrb[40].mxu1 }
 0x2a3   : > { %v2220_v58 = vpop.f32.mrb[41].mxu1 }
 0x2a4   : > { %v845_v59 = vmax.f32 %v2218_v57, %v2220_v58 }
 0x2a6   : > { %846 = vmax.xlane.f32.xlu0 %v845_v59  ;;  %v2224_v62 = vpop.f32.mrb[42].mxu1 }
 0x2a7   : > { %v2226_v2 = vpop.f32.mrb[43].mxu1 }
 0x2a8   : > { %v848_v5 = vmax.f32 %v2224_v62, %v2226_v2 }
 0x2aa   : > { %849 = vmax.xlane.f32.xlu0 %v848_v5  ;;  %v2230_v8 = vpop.f32.mrb[44].mxu1 }
 0x2ab   : > { %v2232_v11 = vpop.f32.mrb[45].mxu1 }
 0x2ac   : > { %v851_v14 = vmax.f32 %v2230_v8, %v2232_v11 }
 0x2ae   : > { %852 = vmax.xlane.f32.xlu0 %v851_v14  ;;  %v2236_v17 = vpop.f32.mrb[46].mxu1 }
 0x2af   : > { %v2238_v20 = vpop.f32.mrb[47].mxu1 }
 0x2b0   : > { %2767 = vst [vmem:[#allocation6_spill] sm:$0xff] %v2238_v20  ;;  %v854_v23 = vmax.f32 %v2236_v17, %v2238_v20 }
 0x2b2   : > { %855 = vmax.xlane.f32.xlu0 %v854_v23  ;;  %v2242_v26 = vpop.f32.mrb[48].mxu1 }
 0x2b3   : > { %2768 = vst [vmem:[#allocation7_spill] sm:$0xff] %v2242_v26  ;;  %v2244_v29 = vpop.f32.mrb[49].mxu1 }
 0x2b4   : > { %2769 = vst [vmem:[#allocation8_spill] sm:$0xff] %v2244_v29  ;;  %v857_v32 = vmax.f32 %v2242_v26, %v2244_v29 }
 0x2b6   : > { %858 = vmax.xlane.f32.xlu0 %v857_v32  ;;  %v2248_v35 = vpop.f32.mrb[50].mxu1 }
 0x2b7   : > { %2770 = vst [vmem:[#allocation9_spill] sm:$0xff] %v2248_v35  ;;  %v2250_v38 = vpop.f32.mrb[51].mxu1 }
 0x2b8   : > { %2771 = vst [vmem:[#allocation10_spill] sm:$0xff] %v2250_v38  ;;  %v860_v44 = vmax.f32 %v2248_v35, %v2250_v38 }
 0x2ba   : > { %861 = vmax.xlane.f32.xlu0 %v860_v44  ;;  %v2259_v47 = vpop.f32.mrb[52].mxu1 }
 0x2bb   : > { %2772 = vst [vmem:[#allocation11_spill] sm:$0xff] %v2259_v47  ;;  %v2261_v50 = vpop.f32.mrb[53].mxu1 }
 0x2bc   : > { %2773 = vst [vmem:[#allocation12_spill] sm:$0xff] %v2261_v50  ;;  %v863_v56 = vmax.f32 %v2259_v47, %v2261_v50 }
 0x2be   : > { %864 = vmax.xlane.f32.xlu0 %v863_v56  ;;  %v2270_v59 = vpop.f32.mrb[54].mxu1  ;;  %v2780_v56 = vmov 0.0  }
 0x2bf   : > { %2774 = vst [vmem:[#allocation13_spill] sm:$0xff] %v2270_v59  ;;  %v2272_v5 = vpop.f32.mrb[55].mxu1 }
 0x2c0   : > { %2775 = vst [vmem:[#allocation14_spill] sm:$0xff] %v2272_v5  ;;  %v866_v14 = vmax.f32 %v2270_v59, %v2272_v5 }
 0x2c2   : > { %867 = vmax.xlane.f32.xlu0 %v866_v14  ;;  %v2276_v23 = vpop.f32.mrb[56].mxu1 }
 0x2c3   : > { %2776 = vst [vmem:[#allocation15_spill] sm:$0xff] %v2276_v23  ;;  %v2278_v32 = vpop.f32.mrb[57].mxu1 }
 0x2c4   : > { %2777 = vst [vmem:[#allocation16_spill] sm:$0xff] %v2278_v32  ;;  %v869_v41 = vmax.f32 %v2276_v23, %v2278_v32  ;;  %v209_v32 = vld [vmem:[%s2734_s1 + $0x20] sm:$0xff] }
 0x2c5   : > { %1467 = vmatmul.mubr.msk.f32.gmra.mrb[8].mxu0 %vm247_vm0, %v209_v32 }
 0x2c6   : > { %870 = vmax.xlane.f32.xlu1 %v869_v41  ;;  %v2282_v44 = vpop.f32.mrb[58].mxu1  ;;  %360 = vmatprep.mubr.f32.mxu0 %v2780_v56 }
 0x2c7   : > { %v2284_v53 = vpop.f32.mrb[59].mxu1 }
 0x2ca   : > { %v2288_v0 = vpop.f32.mrb[60].mxu1 }
 0x2cb   : > { %2778 = vst [vmem:[#allocation17_spill] sm:$0xff] %v2288_v0  ;;  %v2290_v50 = vpop.f32.mrb[61].mxu1 }
 0x2cc   : > { %2779 = vst [vmem:[#allocation18_spill] sm:$0xff] %v2290_v50  ;;  %v875_v14 = vmax.f32 %v2288_v0, %v2290_v50  ;;  %v210_v50 = vld [vmem:[%s2734_s1 + $0x28] sm:$0xff] }
 0x2cd   : > { %1468 = vmatmul.mubr.msk.f32.gmra.mrb[10].mxu0 %vm247_vm0, %v210_v50 }
 0x2ce   : > { %876 = vmax.xlane.f32.xlu1 %v875_v14  ;;  %v2294_v5 = vpop.f32.mrb[62].mxu1 }
 0x2cf   : > { %v2296_v59 = vpop.f32.mrb[63].mxu1 }
 0x2e3   : > { %v787_v14 = vpop.xlane.xlu0 %786 }
 0x2e4   : > { %v881_v0 = vsub.f32 %v2098_v60, %v787_v14  ;;  %v882_v23 = vsub.f32 %v2100_v61, %v787_v14 }
 0x2e6   : > { %v945_v41 = vmul.f32 1.442695, %v881_v0  ;;  %v947_v47 = vmul.f32 1.442695, %v882_v23 }
 0x2e7   : > { %v790_v38 = vpop.xlane.xlu0 %789 }
 0x2e8   : > { %1657 = vpow2.f32 %v945_v41  ;;  %v883_v35 = vsub.f32 %v2104_v63, %v790_v38  ;;  %v884_v32 = vsub.f32 %v2106_v1, %v790_v38 }
 0x2e9   : > { %1659 = vpow2.f32 %v947_v47 }
 0x2ea   : > { %v949_v56 = vmul.f32 1.442695, %v883_v35  ;;  %v951_v29 = vmul.f32 1.442695, %v884_v32 }
 0x2eb   : > { %v793_v26 = vpop.xlane.xlu0 %792 }
 0x2ec   : > { %1661 = vpow2.f32 %v949_v56  ;;  %v885_v50 = vsub.f32 %v2110_v3, %v793_v26  ;;  %v886_v20 = vsub.f32 %v2112_v4, %v793_v26 }
 0x2ed   : > { %1663 = vpow2.f32 %v951_v29 }
 0x2ee   : > { %v953_v60 = vmul.f32 1.442695, %v885_v50  ;;  %v955_v61 = vmul.f32 1.442695, %v886_v20 }
 0x2ef   : > { %v796_v0 = vpop.xlane.xlu0 %795 }
 0x2f0   : > { %1665 = vpow2.f32 %v953_v60  ;;  %v887_v23 = vsub.f32 %v2116_v6, %v796_v0  ;;  %v888_v63 = vsub.f32 %v2118_v7, %v796_v0 }
 0x2f1   : > { %1667 = vpow2.f32 %v955_v61 }
 0x2f2   : > { %v2317_v1 = vpop.eup %1657  ;;  %v957_v35 = vmul.f32 1.442695, %v887_v23  ;;  %v959_v38 = vmul.f32 1.442695, %v888_v63 }
 0x2f3   : > { %v2319_v47 = vpop.eup %1659  ;;  %v799_v41 = vpop.xlane.xlu0 %798 }
 0x2f4   : > { %1669 = vpow2.f32 %v957_v35  ;;  %v889_v3 = vsub.f32 %v2122_v9, %v799_v41  ;;  %v890_v4 = vsub.f32 %v2124_v10, %v799_v41  ;;  %v1073_v20 = vadd.f32 %v2319_v47, %v2317_v1 }
 0x2f5   : > { %1671 = vpow2.f32 %v959_v38 }
 0x2f6   : > { %v2325_v6 = vpop.eup %1661  ;;  %v961_v7 = vmul.f32 1.442695, %v889_v3  ;;  %v963_v26 = vmul.f32 1.442695, %v890_v4  ;;  %1074 = vadd.xlane.f32.xlu0 %v1073_v20 }
 0x2f7   : > { %v2327_v29 = vpop.eup %1663  ;;  %v802_v14 = vpop.xlane.xlu0 %801 }
 0x2f8   : > { %1673 = vpow2.f32 %v961_v7  ;;  %v891_v32 = vsub.f32 %v2128_v12, %v802_v14  ;;  %v892_v56 = vsub.f32 %v2130_v13, %v802_v14  ;;  %v1076_v9 = vadd.f32 %v2327_v29, %v2325_v6 }
 0x2f9   : > { %1675 = vpow2.f32 %v963_v26 }
 0x2fa   : > { %v2333_v10 = vpop.eup %1665  ;;  %v965_v50 = vmul.f32 1.442695, %v891_v32  ;;  %v967_v60 = vmul.f32 1.442695, %v892_v56  ;;  %1077 = vadd.xlane.f32.xlu0 %v1076_v9 }
 0x2fb   : > { %v2335_v61 = vpop.eup %1667  ;;  %v805_v0 = vpop.xlane.xlu0 %804 }
 0x2fc   : > { %1677 = vpow2.f32 %v965_v50  ;;  %v893_v23 = vsub.f32 %v2134_v15, %v805_v0  ;;  %v894_v63 = vsub.f32 %v2136_v16, %v805_v0  ;;  %v1079_v12 = vadd.f32 %v2335_v61, %v2333_v10 }
 0x2fd   : > { %1679 = vpow2.f32 %v967_v60 }
 0x2fe   : > { %v2341_v13 = vpop.eup %1669  ;;  %v969_v35 = vmul.f32 1.442695, %v893_v23  ;;  %v971_v38 = vmul.f32 1.442695, %v894_v63  ;;  %1080 = vadd.xlane.f32.xlu0 %v1079_v12 }
 0x2ff   : > { %v2343_v41 = vpop.eup %1671  ;;  %v808_v3 = vpop.xlane.xlu0 %807 }
 0x300   : > { %1681 = vpow2.f32 %v969_v35  ;;  %v895_v4 = vsub.f32 %v2140_v18, %v808_v3  ;;  %v896_v20 = vsub.f32 %v2142_v19, %v808_v3  ;;  %v1082_v15 = vadd.f32 %v2343_v41, %v2341_v13 }
 0x301   : > { %1683 = vpow2.f32 %v971_v38 }
 0x302   : > { %v2349_v16 = vpop.eup %1673  ;;  %v973_v7 = vmul.f32 1.442695, %v895_v4  ;;  %v975_v26 = vmul.f32 1.442695, %v896_v20  ;;  %1083 = vadd.xlane.f32.xlu0 %v1082_v15 }
 0x303   : > { %v2351_v14 = vpop.eup %1675  ;;  %v811_v32 = vpop.xlane.xlu1 %810 }
 0x304   : > { %1685 = vpow2.f32 %v973_v7  ;;  %v897_v56 = vsub.f32 %v2146_v21, %v811_v32  ;;  %v898_v9 = vsub.f32 %v2148_v22, %v811_v32  ;;  %v1085_v18 = vadd.f32 %v2351_v14, %v2349_v16 }
 0x305   : > { %1687 = vpow2.f32 %v975_v26  ;;  %v2781_v32 = vmax.f32 %v2282_v44, %v2284_v53 }
 0x306   : > { %v2357_v19 = vpop.eup %1677  ;;  %v977_v50 = vmul.f32 1.442695, %v897_v56  ;;  %v979_v60 = vmul.f32 1.442695, %v898_v9  ;;  %1086 = vadd.xlane.f32.xlu0 %v1085_v18 }
 0x307   : > { %v2359_v0 = vpop.eup %1679  ;;  %v814_v23 = vpop.xlane.xlu0 %813 }
 0x308   : > { %1689 = vpow2.f32 %v977_v50  ;;  %v899_v63 = vsub.f32 %v2152_v24, %v814_v23  ;;  %v900_v12 = vsub.f32 %v2154_v25, %v814_v23  ;;  %v1088_v21 = vadd.f32 %v2359_v0, %v2357_v19 }
 0x309   : > { %1691 = vpow2.f32 %v979_v60 }
 0x30a   : > { %v2365_v22 = vpop.eup %1681  ;;  %v981_v35 = vmul.f32 1.442695, %v899_v63  ;;  %v983_v38 = vmul.f32 1.442695, %v900_v12  ;;  %1089 = vadd.xlane.f32.xlu0 %v1088_v21 }
 0x30b   : > { %v2367_v3 = vpop.eup %1683  ;;  %v817_v4 = vpop.xlane.xlu0 %816 }
 0x30c   : > { %1693 = vpow2.f32 %v981_v35  ;;  %v901_v20 = vsub.f32 %v2158_v27, %v817_v4  ;;  %v902_v15 = vsub.f32 %v2160_v28, %v817_v4  ;;  %v1091_v24 = vadd.f32 %v2367_v3, %v2365_v22 }
 0x30d   : > { %1695 = vpow2.f32 %v983_v38 }
 0x30e   : > { %v2373_v25 = vpop.eup %1685  ;;  %v985_v7 = vmul.f32 1.442695, %v901_v20  ;;  %v987_v26 = vmul.f32 1.442695, %v902_v15  ;;  %873 = vmax.xlane.f32.xlu0 %v2781_v32  ;;  %1092 = vadd.xlane.f32.xlu1 %v1091_v24  ;;  %v2782_v20 = vmax.f32 %v2294_v5, %v2296_v59 }
 0x30f   : > { %v2378_v56 = vpop.eup %1687  ;;  %v820_v9 = vpop.xlane.xlu0 %819 }
 0x310   : > { %1697 = vpow2.f32 %v985_v7  ;;  %v903_v27 = vsub.f32 %v2164_v30, %v820_v9  ;;  %v904_v28 = vsub.f32 %v2166_v31, %v820_v9  ;;  %v1094_v18 = vadd.f32 %v2378_v56, %v2373_v25 }
 0x311   : > { %1699 = vpow2.f32 %v987_v26 }
 0x312   : > { %v2384_v50 = vpop.eup %1689  ;;  %v989_v60 = vmul.f32 1.442695, %v903_v27  ;;  %v991_v23 = vmul.f32 1.442695, %v904_v28  ;;  %1095 = vadd.xlane.f32.xlu0 %v1094_v18 }
 0x313   : > { %v2386_v63 = vpop.eup %1691  ;;  %v823_v12 = vpop.xlane.xlu0 %822 }
 0x314   : > { %1701 = vpow2.f32 %v989_v60  ;;  %v905_v21 = vsub.f32 %v2170_v33, %v823_v12  ;;  %v906_v35 = vsub.f32 %v2172_v34, %v823_v12  ;;  %v1097_v30 = vadd.f32 %v2386_v63, %v2384_v50 }
 0x315   : > { %1703 = vpow2.f32 %v991_v23 }
 0x316   : > { %v2392_v31 = vpop.eup %1693  ;;  %v993_v38 = vmul.f32 1.442695, %v905_v21  ;;  %v995_v4 = vmul.f32 1.442695, %v906_v35  ;;  %879 = vmax.xlane.f32.xlu0 %v2782_v20  ;;  %1098 = vadd.xlane.f32.xlu1 %v1097_v30 }
 0x317   : > { %v2397_v15 = vpop.eup %1695  ;;  %v826_v24 = vpop.xlane.xlu0 %825 }
 0x318   : > { %1705 = vpow2.f32 %v993_v38  ;;  %v907_v33 = vsub.f32 %v2176_v36, %v826_v24  ;;  %v908_v34 = vsub.f32 %v2178_v37, %v826_v24  ;;  %v1100_v7 = vadd.f32 %v2397_v15, %v2392_v31 }
 0x319   : > { %1707 = vpow2.f32 %v995_v4 }
 0x31a   : > { %v2403_v26 = vpop.eup %1697  ;;  %v997_v32 = vmul.f32 1.442695, %v907_v33  ;;  %v999_v9 = vmul.f32 1.442695, %v908_v34  ;;  %1101 = vadd.xlane.f32.xlu0 %v1100_v7 }
 0x31b   : > { %v2405_v27 = vpop.eup %1699  ;;  %v829_v28 = vpop.xlane.xlu0 %828 }
 0x31c   : > { %1709 = vpow2.f32 %v997_v32  ;;  %v909_v18 = vsub.f32 %v2182_v39, %v829_v28  ;;  %v910_v60 = vsub.f32 %v2184_v40, %v829_v28  ;;  %v1103_v36 = vadd.f32 %v2405_v27, %v2403_v26 }
 0x31d   : > { %1711 = vpow2.f32 %v999_v9 }
 0x31e   : > { %v2411_v37 = vpop.eup %1701  ;;  %v1001_v23 = vmul.f32 1.442695, %v909_v18  ;;  %v1003_v12 = vmul.f32 1.442695, %v910_v60  ;;  %1104 = vadd.xlane.f32.xlu1 %v1103_v36 }
 0x31f   : > { %v2413_v21 = vpop.eup %1703  ;;  %v832_v35 = vpop.xlane.xlu0 %831 }
 0x320   : > { %1713 = vpow2.f32 %v1001_v23  ;;  %v911_v30 = vsub.f32 %v2188_v42, %v832_v35  ;;  %v912_v38 = vsub.f32 %v2190_v43, %v832_v35  ;;  %v1106_v39 = vadd.f32 %v2413_v21, %v2411_v37 }
 0x321   : > { %1715 = vpow2.f32 %v1003_v12 }
 0x322   : > { %v2419_v40 = vpop.eup %1705  ;;  %v1005_v4 = vmul.f32 1.442695, %v911_v30  ;;  %v1007_v20 = vmul.f32 1.442695, %v912_v38  ;;  %1107 = vadd.xlane.f32.xlu0 %v1106_v39 }
 0x323   : > { %v2421_v24 = vpop.eup %1707  ;;  %v835_v33 = vpop.xlane.xlu0 %834 }
 0x324   : > { %1717 = vpow2.f32 %v1005_v4  ;;  %v913_v34 = vsub.f32 %v2194_v45, %v835_v33  ;;  %v914_v7 = vsub.f32 %v2196_v46, %v835_v33  ;;  %v1109_v42 = vadd.f32 %v2421_v24, %v2419_v40 }
 0x325   : > { %1719 = vpow2.f32 %v1007_v20 }
 0x326   : > { %v2427_v43 = vpop.eup %1709  ;;  %v1009_v32 = vmul.f32 1.442695, %v913_v34  ;;  %v1011_v9 = vmul.f32 1.442695, %v914_v7  ;;  %1110 = vadd.xlane.f32.xlu1 %v1109_v42 }
 0x327   : > { %v2429_v28 = vpop.eup %1711  ;;  %v838_v18 = vpop.xlane.xlu0 %837 }
 0x328   : > { %1721 = vpow2.f32 %v1009_v32  ;;  %v915_v60 = vsub.f32 %v2200_v48, %v838_v18  ;;  %v916_v36 = vsub.f32 %v2202_v49, %v838_v18  ;;  %v1112_v45 = vadd.f32 %v2429_v28, %v2427_v43 }
 0x329   : > { %1723 = vpow2.f32 %v1011_v9 }
 0x32a   : > { %v2435_v46 = vpop.eup %1713  ;;  %v1013_v23 = vmul.f32 1.442695, %v915_v60  ;;  %v1015_v12 = vmul.f32 1.442695, %v916_v36  ;;  %1113 = vadd.xlane.f32.xlu0 %v1112_v45 }
 0x32b   : > { %v2437_v35 = vpop.eup %1715  ;;  %v841_v30 = vpop.xlane.xlu0 %840 }
 0x32c   : > { %1725 = vpow2.f32 %v1013_v23  ;;  %v917_v38 = vsub.f32 %v2206_v51, %v841_v30  ;;  %v918_v39 = vsub.f32 %v2208_v52, %v841_v30  ;;  %v1115_v48 = vadd.f32 %v2437_v35, %v2435_v46 }
 0x32d   : > { %1727 = vpow2.f32 %v1015_v12 }
 0x32e   : > { %v2443_v49 = vpop.eup %1717  ;;  %v1017_v4 = vmul.f32 1.442695, %v917_v38  ;;  %v1019_v20 = vmul.f32 1.442695, %v918_v39  ;;  %1116 = vadd.xlane.f32.xlu1 %v1115_v48 }
 0x32f   : > { %v2445_v33 = vpop.eup %1719  ;;  %v844_v34 = vpop.xlane.xlu0 %843 }
 0x330   : > { %1729 = vpow2.f32 %v1017_v4  ;;  %v919_v7 = vsub.f32 %v2212_v54, %v844_v34  ;;  %v920_v42 = vsub.f32 %v2214_v55, %v844_v34  ;;  %v1118_v51 = vadd.f32 %v2445_v33, %v2443_v49 }
 0x331   : > { %1731 = vpow2.f32 %v1019_v20 }
 0x332   : > { %v2451_v52 = vpop.eup %1721  ;;  %v1021_v32 = vmul.f32 1.442695, %v919_v7  ;;  %v1023_v9 = vmul.f32 1.442695, %v920_v42  ;;  %1119 = vadd.xlane.f32.xlu0 %v1118_v51 }
 0x333   : > { %v2453_v18 = vpop.eup %1723  ;;  %v847_v60 = vpop.xlane.xlu0 %846 }
 0x334   : > { %1733 = vpow2.f32 %v1021_v32  ;;  %v921_v36 = vsub.f32 %v2218_v57, %v847_v60  ;;  %v922_v45 = vsub.f32 %v2220_v58, %v847_v60  ;;  %v1121_v54 = vadd.f32 %v2453_v18, %v2451_v52 }
 0x335   : > { %1735 = vpow2.f32 %v1023_v9 }
 0x336   : > { %v2459_v55 = vpop.eup %1725  ;;  %v1025_v23 = vmul.f32 1.442695, %v921_v36  ;;  %v1027_v12 = vmul.f32 1.442695, %v922_v45  ;;  %1122 = vadd.xlane.f32.xlu1 %v1121_v54  ;;  %v2783_v54 = vld [vmem:[#allocation6_spill] sm:$0xff] }
 0x337   : > { %v2461_v30 = vpop.eup %1727  ;;  %v850_v38 = vpop.xlane.xlu0 %849 }
 0x338   : > { %1737 = vpow2.f32 %v1025_v23  ;;  %v923_v39 = vsub.f32 %v2224_v62, %v850_v38  ;;  %v924_v48 = vsub.f32 %v2226_v2, %v850_v38  ;;  %v1124_v57 = vadd.f32 %v2461_v30, %v2459_v55 }
 0x339   : > { %1739 = vpow2.f32 %v1027_v12 }
 0x33a   : > { %v2467_v58 = vpop.eup %1729  ;;  %v1029_v4 = vmul.f32 1.442695, %v923_v39  ;;  %v1031_v20 = vmul.f32 1.442695, %v924_v48  ;;  %1125 = vadd.xlane.f32.xlu0 %v1124_v57  ;;  %v2785_v57 = vld [vmem:[#allocation7_spill] sm:$0xff] }
 0x33b   : > { %v2469_v34 = vpop.eup %1731  ;;  %v853_v7 = vpop.xlane.xlu0 %852 }
 0x33c   : > { %1741 = vpow2.f32 %v1029_v4  ;;  %v925_v42 = vsub.f32 %v2230_v8, %v853_v7  ;;  %v926_v51 = vsub.f32 %v2232_v11, %v853_v7  ;;  %v1127_v62 = vadd.f32 %v2469_v34, %v2467_v58 }
 0x33d   : > { %1743 = vpow2.f32 %v1031_v20  ;;  %v2786_v20 = vld [vmem:[#allocation8_spill] sm:$0xff] }
 0x33e   : > { %v2475_v2 = vpop.eup %1733  ;;  %v1033_v32 = vmul.f32 1.442695, %v925_v42  ;;  %v1035_v9 = vmul.f32 1.442695, %v926_v51  ;;  %1128 = vadd.xlane.f32.xlu1 %v1127_v62 }
 0x33f   : > { %v2477_v60 = vpop.eup %1735  ;;  %v856_v36 = vpop.xlane.xlu0 %855 }
 0x340   : > { %1745 = vpow2.f32 %v1033_v32  ;;  %v927_v45 = vsub.f32 %v2236_v17, %v856_v36  ;;  %v928_v23 = vsub.f32 %v2783_v54, %v856_v36  ;;  %v1130_v8 = vadd.f32 %v2477_v60, %v2475_v2  ;;  %v2788_v36 = vld [vmem:[#allocation9_spill] sm:$0xff]  ;;  %v2789_v54 = vld [vmem:[#allocation10_spill] sm:$0xff] }
 0x341   : > { %1747 = vpow2.f32 %v1035_v9 }
 0x342   : > { %v2483_v11 = vpop.eup %1737  ;;  %v1037_v12 = vmul.f32 1.442695, %v927_v45  ;;  %v1039_v38 = vmul.f32 1.442695, %v928_v23  ;;  %1131 = vadd.xlane.f32.xlu0 %v1130_v8 }
 0x343   : > { %2784 = vst [vmem:[#allocation6_spill] sm:$0xff] %v2483_v11  ;;  %v2485_v39 = vpop.eup %1739  ;;  %v859_v48 = vpop.xlane.xlu0 %858 }
 0x344   : > { %1749 = vpow2.f32 %v1037_v12  ;;  %v929_v4 = vsub.f32 %v2785_v57, %v859_v48  ;;  %v930_v7 = vsub.f32 %v2786_v20, %v859_v48  ;;  %v1133_v17 = vadd.f32 %v2485_v39, %v2483_v11  ;;  %v2792_v20 = vld [vmem:[#allocation11_spill] sm:$0xff] }
 0x345   : > { %1751 = vpow2.f32 %v1039_v38 }
 0x346   : > { %v2491_v42 = vpop.eup %1741  ;;  %v1041_v51 = vmul.f32 1.442695, %v929_v4  ;;  %v1043_v62 = vmul.f32 1.442695, %v930_v7  ;;  %1134 = vadd.xlane.f32.xlu1 %v1133_v17  ;;  %v2793_v17 = vld [vmem:[#allocation12_spill] sm:$0xff] }
 0x347   : > { %2787 = vst [vmem:[#allocation7_spill] sm:$0xff] %v2491_v42  ;;  %v2493_v32 = vpop.eup %1743  ;;  %v862_v9 = vpop.xlane.xlu0 %861 }
 0x348   : > { %1753 = vpow2.f32 %v1041_v51  ;;  %v931_v45 = vsub.f32 %v2788_v36, %v862_v9  ;;  %v932_v23 = vsub.f32 %v2789_v54, %v862_v9  ;;  %v1136_v8 = vadd.f32 %v2493_v32, %v2491_v42 }
 0x349   : > { %1755 = vpow2.f32 %v1043_v62 }
 0x34a   : > { %v2499_v12 = vpop.eup %1745  ;;  %v1045_v38 = vmul.f32 1.442695, %v931_v45  ;;  %v1047_v48 = vmul.f32 1.442695, %v932_v23  ;;  %1137 = vadd.xlane.f32.xlu0 %v1136_v8  ;;  %v2794_v8 = vld [vmem:[#allocation13_spill] sm:$0xff] }
 0x34b   : > { %2790 = vst [vmem:[#allocation8_spill] sm:$0xff] %v2499_v12  ;;  %v2501_v57 = vpop.eup %1747  ;;  %v865_v4 = vpop.xlane.xlu0 %864 }
 0x34c   : > { %2791 = vst [vmem:[#allocation9_spill] sm:$0xff] %v2501_v57  ;;  %1757 = vpow2.f32 %v1045_v38  ;;  %v933_v7 = vsub.f32 %v2792_v20, %v865_v4  ;;  %v934_v51 = vsub.f32 %v2793_v17, %v865_v4  ;;  %v1139_v9 = vadd.f32 %v2501_v57, %v2499_v12  ;;  %v2795_v38 = vld [vmem:[#allocation14_spill] sm:$0xff] }
 0x34d   : > { %1759 = vpow2.f32 %v1047_v48 }
 0x34e   : > { %v2507_v36 = vpop.eup %1749  ;;  %v1049_v62 = vmul.f32 1.442695, %v933_v7  ;;  %v1051_v54 = vmul.f32 1.442695, %v934_v51  ;;  %1140 = vadd.xlane.f32.xlu1 %v1139_v9  ;;  %v2797_v9 = vld [vmem:[#allocation15_spill] sm:$0xff] }
 0x34f   : > { %v2509_v45 = vpop.eup %1751  ;;  %v868_v23 = vpop.xlane.xlu0 %867 }
 0x350   : > { %1761 = vpow2.f32 %v1049_v62  ;;  %v935_v11 = vsub.f32 %v2794_v8, %v868_v23  ;;  %v936_v42 = vsub.f32 %v2795_v38, %v868_v23  ;;  %v1142_v4 = vadd.f32 %v2509_v45, %v2507_v36  ;;  %v2798_v62 = vld [vmem:[#allocation16_spill] sm:$0xff] }
 0x351   : > { %1763 = vpow2.f32 %v1051_v54 }
 0x352   : > { %v2515_v20 = vpop.eup %1753  ;;  %v1053_v48 = vmul.f32 1.442695, %v935_v11  ;;  %v1055_v17 = vmul.f32 1.442695, %v936_v42  ;;  %1143 = vadd.xlane.f32.xlu0 %v1142_v4 }
 0x353   : > { %2796 = vst [vmem:[#allocation10_spill] sm:$0xff] %v2515_v20  ;;  %v2517_v7 = vpop.eup %1755  ;;  %v871_v51 = vpop.xlane.xlu1 %870 }
 0x354   : > { %1765 = vpow2.f32 %v1053_v48  ;;  %v937_v12 = vsub.f32 %v2797_v9, %v871_v51  ;;  %v938_v57 = vsub.f32 %v2798_v62, %v871_v51  ;;  %v1145_v23 = vadd.f32 %v2517_v7, %v2515_v20 }
 0x355   : > { %1767 = vpow2.f32 %v1055_v17 }
 0x356   : > { %v2523_v8 = vpop.eup %1757  ;;  %v1057_v54 = vmul.f32 1.442695, %v937_v12  ;;  %v1059_v38 = vmul.f32 1.442695, %v938_v57  ;;  %1146 = vadd.xlane.f32.xlu1 %v1145_v23 }
 0x357   : > { %2799 = vst [vmem:[#allocation11_spill] sm:$0xff] %v2523_v8  ;;  %v2525_v11 = vpop.eup %1759 }
 0x358   : > { %2800 = vst [vmem:[#allocation12_spill] sm:$0xff] %v2525_v11  ;;  %1769 = vpow2.f32 %v1057_v54  ;;  %v1148_v42 = vadd.f32 %v2525_v11, %v2523_v8  ;;  %v214_v54 = vld [vmem:[%s2735_s2 + $0x18] sm:$0xff] }
 0x359   : > { %1771 = vpow2.f32 %v1059_v38 }
 0x35a   : > { %v2529_v4 = vpop.eup %1761  ;;  %1149 = vadd.xlane.f32.xlu0 %v1148_v42  ;;  %v2807_v42 = vld [vmem:[#allocation17_spill] sm:$0xff] }
 0x35b   : > { %2801 = vst [vmem:[#allocation13_spill] sm:$0xff] %v2529_v4  ;;  %v2531_v48 = vpop.eup %1763  ;;  %v877_v38 = vpop.xlane.xlu1 %876 }
 0x35c   : > { %2802 = vst [vmem:[#allocation14_spill] sm:$0xff] %v2531_v48  ;;  %v1151_v17 = vadd.f32 %v2531_v48, %v2529_v4  ;;  %v2808_v48 = vld [vmem:[#allocation18_spill] sm:$0xff] }
 0x35e   : > { %v2535_v51 = vpop.eup %1765  ;;  %1152 = vadd.xlane.f32.xlu1 %v1151_v17  ;;  %v941_v17 = vsub.f32 %v2807_v42, %v877_v38 }
 0x35f   : > { %2803 = vst [vmem:[#allocation15_spill] sm:$0xff] %v2535_v51  ;;  %v2537_v12 = vpop.eup %1767 }
 0x360   : > { %2804 = vst [vmem:[#allocation16_spill] sm:$0xff] %v2537_v12  ;;  %v1154_v57 = vadd.f32 %v2537_v12, %v2535_v51  ;;  %v942_v51 = vsub.f32 %v2808_v48, %v877_v38  ;;  %v1065_v12 = vmul.f32 1.442695, %v941_v17 }
 0x362   : > { %v2541_v9 = vpop.eup %1769  ;;  %1155 = vadd.xlane.f32.xlu0 %v1154_v57  ;;  %v1067_v20 = vmul.f32 1.442695, %v942_v51 }
 0x363   : > { %2805 = vst [vmem:[#allocation19_spill] sm:$0xff] %v2541_v9  ;;  %v2543_v62 = vpop.eup %1771 }
 0x364   : > { %2806 = vst [vmem:[#allocation20_spill] sm:$0xff] %v2543_v62  ;;  %v1157_v23 = vadd.f32 %v2543_v62, %v2541_v9  ;;  %v2552_v9 = vpop.f32.mrb[4].mxu0 }
 0x365   : > { %2809 = vst [vmem:[#allocation17_spill] sm:$0xff] %v2552_v9 }
 0x366   : > { %1158 = vadd.xlane.f32.xlu1 %v1157_v23  ;;  %v2554_v23 = vpop.f32.mrb[5].mxu0 }
 0x367   : > { %2810 = vst [vmem:[#allocation18_spill] sm:$0xff] %v2554_v23 }
 0x372   : > { %v2556_v62 = vpop.f32.mrb[6].mxu0 }
 0x373   : > { %v2558_v11 = vpop.f32.mrb[7].mxu0 }
 0x377   : > { %234 = vperm.xlu1 %1656, %v214_v54  }
 0x383   : > { %v1075_v4 = vpop.xlane.xlu0 %1074 }
 0x384   : > { %1773 = vrcp.f32 %v1075_v4 }
 0x387   : > { %v1078_v57 = vpop.xlane.xlu0 %1077 }
 0x388   : > { %1775 = vrcp.f32 %v1078_v57 }
 0x389   : > { %1777 = vpow2.f32 %v1065_v12 }
 0x38a   : > { %1779 = vpow2.f32 %v1067_v20 }
 0x38b   : > { %v1081_v8 = vpop.xlane.xlu0 %1080 }
 0x38c   : > { %1781 = vrcp.f32 %v1081_v8 }
 0x38e   : > { %v1774_v42 = vpop.eup %1773 }
 0x38f   : > { %v1084_v54 = vpop.xlane.xlu0 %1083  ;;  %v1202_v51 = vmul.f32 %v1774_v42, %v2319_v47  ;;  %v1201_v38 = vmul.f32 %v1774_v42, %v2317_v1 }
 0x390   : > { %1783 = vrcp.f32 %v1084_v54 }
 0x392   : > { %v1776_v4 = vpop.eup %1775 }
 0x393   : > { %v1087_v48 = vpop.xlane.xlu0 %1086  ;;  %v1204_v12 = vmul.f32 %v1776_v4, %v2327_v29  ;;  %v1203_v20 = vmul.f32 %v1776_v4, %v2325_v6  ;;  %v2564_v17 = vpop.eup %1777 }
 0x394   : > { %v2566_v9 = vpop.eup %1779  ;;  %1785 = vrcp.f32 %v1087_v48 }
 0x395   : > { %v1516_v8 = vpack.c.bf16 %v1204_v12, %v1202_v51  ;;  %v1518_v57 = vpack.c.bf16 %v1203_v20, %v1201_v38  ;;  %v1163_v47 = vadd.f32 %v2566_v9, %v2564_v17 }
 0x396   : > { %v1782_v23 = vpop.eup %1781 }
 0x397   : > { %1517 = vmatprep.subr.bf16.mxu0 %v1516_v8  ;;  %1580 = vmatprep.subr.bf16.mxu1 %v1516_v8  ;;  %v1090_v54 = vpop.xlane.xlu0 %1089  ;;  %v1206_v6 = vmul.f32 %v1782_v23, %v2335_v61  ;;  %v1205_v4 = vmul.f32 %v1782_v23, %v2333_v10 }
 0x398   : > { %1787 = vrcp.f32 %v1090_v54  ;;  %1519 = vmatpush1.bf16.xpose.msra.mxu0 %v1518_v57  ;;  %1596 = vmatpush1.bf16.xpose.msra.mxu1 %v1518_v57 }
 0x39a   : > { %v1784_v1 = vpop.eup %1783 }
 0x39b   : > { %v874_v29 = vpop.xlane.xlu0 %873  ;;  %1164 = vadd.xlane.f32.xlu1 %v1163_v47  ;;  %v1208_v42 = vmul.f32 %v1784_v1, %v2343_v41  ;;  %v1207_v48 = vmul.f32 %v1784_v1, %v2341_v13  ;;  %v1093_v38 = vpop.xlane.xlu1 %1092 }
 0x39c   : > { %v939_v51 = vsub.f32 %v2282_v44, %v874_v29  ;;  %v940_v12 = vsub.f32 %v2284_v53, %v874_v29  ;;  %1789 = vrcp.f32 %v1093_v38 }
 0x39d   : > { %v1520_v20 = vpack.c.bf16 %v1208_v42, %v1206_v6  ;;  %v1522_v8 = vpack.c.bf16 %v1207_v48, %v1205_v4 }
 0x39e   : > { %v1061_v57 = vmul.f32 1.442695, %v939_v51  ;;  %v1063_v54 = vmul.f32 1.442695, %v940_v12  ;;  %v1786_v61 = vpop.eup %1785 }
 0x39f   : > { %1521 = vmatprep.subr.bf16.mxu0 %v1520_v20  ;;  %1581 = vmatprep.subr.bf16.mxu1 %v1520_v20  ;;  %v1096_v47 = vpop.xlane.xlu0 %1095  ;;  %v1210_v44 = vmul.f32 %v1786_v61, %v2351_v14  ;;  %v1209_v41 = vmul.f32 %v1786_v61, %v2349_v16  ;;  %v2598_v61 = vpop.f32.mrb[8].mxu0 }
 0x3a0   : > { %1791 = vpow2.f32 %v1061_v57  ;;  %1523 = vmatpush1.bf16.xpose.msra.mxu0 %v1522_v8  ;;  %1597 = vmatpush1.bf16.xpose.msra.mxu1 %v1522_v8  ;;  %v216_v57 = vld [vmem:[%s2735_s2 + $0x28] sm:$0xff] }
 0x3a1   : > { %1793 = vpow2.f32 %v1063_v54 }
 0x3a2   : > { %v1788_v10 = vpop.eup %1787  ;;  %1795 = vrcp.f32 %v1096_v47 }
 0x3a3   : > { %v880_v13 = vpop.xlane.xlu0 %879  ;;  %v1212_v53 = vmul.f32 %v1788_v10, %v2359_v0  ;;  %v1211_v23 = vmul.f32 %v1788_v10, %v2357_v19  ;;  %v1099_v6 = vpop.xlane.xlu1 %1098 }
 0x3a4   : > { %v943_v1 = vsub.f32 %v2294_v5, %v880_v13  ;;  %v944_v29 = vsub.f32 %v2296_v59, %v880_v13  ;;  %1797 = vrcp.f32 %v1099_v6  ;;  %v213_v5 = vld [vmem:[%s2735_s2 + $0x10] sm:$0xff]  ;;  %v2600_v10 = vpop.f32.mrb[9].mxu0 }
 0x3a5   : > { %v1524_v42 = vpack.c.bf16 %v1212_v53, %v1210_v44  ;;  %v1526_v4 = vpack.c.bf16 %v1211_v23, %v1209_v41 }
 0x3a6   : > { %v1069_v48 = vmul.f32 1.442695, %v943_v1  ;;  %v1071_v51 = vmul.f32 1.442695, %v944_v29  ;;  %v1790_v14 = vpop.eup %1789 }
 0x3a7   : > { %1525 = vmatprep.subr.bf16.mxu0 %v1524_v42  ;;  %1582 = vmatprep.subr.bf16.mxu1 %v1524_v42  ;;  %v1102_v12 = vpop.xlane.xlu0 %1101  ;;  %v1214_v20 = vmul.f32 %v1790_v14, %v2367_v3  ;;  %v1213_v54 = vmul.f32 %v1790_v14, %v2365_v22  ;;  %v2602_v3 = vpop.f32.mrb[10].mxu0 }
 0x3a8   : > { %1799 = vpow2.f32 %v1069_v48  ;;  %1527 = vmatpush1.bf16.xpose.msra.mxu0 %v1526_v4  ;;  %1598 = vmatpush1.bf16.xpose.msra.mxu1 %v1526_v4 }
 0x3a9   : > { %1801 = vpow2.f32 %v1071_v51 }
 0x3aa   : > { %v2585_v16 = vpop.eup %1791  ;;  %1803 = vrcp.f32 %v1102_v12 }
 0x3ab   : > { %v2587_v59 = vpop.eup %1793  ;;  %v1105_v19 = vpop.xlane.xlu1 %1104 }
 0x3ac   : > { %v1796_v0 = vpop.eup %1795  ;;  %229 = vperm.xlu1 %1656, %v213_v5   ;;  %v1160_v38 = vadd.f32 %v2587_v59, %v2585_v16  ;;  %1805 = vrcp.f32 %v1105_v19 }
 0x3ad   : > { %v1216_v8 = vmul.f32 %v1796_v0, %v2378_v56  ;;  %v1215_v47 = vmul.f32 %v1796_v0, %v2373_v25  ;;  %v2604_v56 = vpop.f32.mrb[11].mxu0 }
 0x3ae   : > { %1161 = vadd.xlane.f32.xlu0 %v1160_v38  ;;  %v1798_v41 = vpop.eup %1797 }
 0x3af   : > { %v1108_v13 = vpop.xlane.xlu0 %1107  ;;  %v1528_v44 = vpack.c.bf16 %v1216_v8, %v1214_v20  ;;  %v1530_v53 = vpack.c.bf16 %v1215_v47, %v1213_v54  ;;  %v1218_v6 = vmul.f32 %v1798_v41, %v2386_v63  ;;  %v1217_v4 = vmul.f32 %v1798_v41, %v2384_v50 }
 0x3b0   : > { %1807 = vrcp.f32 %v1108_v13  ;;  %244 = vperm.xlu1 %1656, %v216_v57  }
 0x3b1   : > { %1529 = vmatprep.subr.bf16.mxu0 %v1528_v44  ;;  %1583 = vmatprep.subr.bf16.mxu1 %v1528_v44 }
 0x3b2   : > { %v2606_v22 = vpop.eup %1799  ;;  %1531 = vmatpush1.bf16.xpose.msra.mxu0 %v1530_v53  ;;  %1599 = vmatpush1.bf16.xpose.msra.mxu1 %v1530_v53 }
 0x3b3   : > { %v2608_v25 = vpop.eup %1801  ;;  %v1111_v23 = vpop.xlane.xlu1 %1110 }
 0x3b4   : > { %v1804_v1 = vpop.eup %1803  ;;  %v1166_v29 = vadd.f32 %v2608_v25, %v2606_v22  ;;  %1809 = vrcp.f32 %v1111_v23  ;;  %v215_v23 = vld [vmem:[%s2735_s2 + $0x20] sm:$0xff] }
 0x3b5   : > { %v1220_v42 = vmul.f32 %v1804_v1, %v2397_v15  ;;  %v1219_v48 = vmul.f32 %v1804_v1, %v2392_v31 }
 0x3b6   : > { %1167 = vadd.xlane.f32.xlu0 %v1166_v29  ;;  %v1806_v5 = vpop.eup %1805 }
 0x3b7   : > { %v1114_v51 = vpop.xlane.xlu0 %1113  ;;  %v1532_v12 = vpack.c.bf16 %v1220_v42, %v1218_v6  ;;  %v1534_v14 = vpack.c.bf16 %v1219_v48, %v1217_v4  ;;  %v1222_v63 = vmul.f32 %v1806_v5, %v2405_v27  ;;  %v1221_v31 = vmul.f32 %v1806_v5, %v2403_v26 }
 0x3b8   : > { %1811 = vrcp.f32 %v1114_v51 }
 0x3b9   : > { %1533 = vmatprep.subr.bf16.mxu0 %v1532_v12  ;;  %1584 = vmatprep.subr.bf16.mxu1 %v1532_v12 }
 0x3ba   : > { %v1808_v19 = vpop.eup %1807  ;;  %1535 = vmatpush1.bf16.xpose.msra.mxu0 %v1534_v14  ;;  %1600 = vmatpush1.bf16.xpose.msra.mxu1 %v1534_v14 }
 0x3bb   : > { %v1117_v0 = vpop.xlane.xlu1 %1116  ;;  %v1224_v15 = vmul.f32 %v1808_v19, %v2413_v21  ;;  %v1223_v50 = vmul.f32 %v1808_v19, %v2411_v37 }
 0x3bc   : > { %1813 = vrcp.f32 %v1117_v0 }
 0x3bd   : > { %v1536_v38 = vpack.c.bf16 %v1224_v15, %v1222_v63  ;;  %v1538_v20 = vpack.c.bf16 %v1223_v50, %v1221_v31 }
 0x3be   : > { %v1810_v57 = vpop.eup %1809 }
 0x3bf   : > { %v1120_v8 = vpop.xlane.xlu0 %1119  ;;  %1537 = vmatprep.subr.bf16.mxu0 %v1536_v38  ;;  %1585 = vmatprep.subr.bf16.mxu1 %v1536_v38  ;;  %v1226_v27 = vmul.f32 %v1810_v57, %v2421_v24  ;;  %v1225_v26 = vmul.f32 %v1810_v57, %v2419_v40 }
 0x3c0   : > { %1815 = vrcp.f32 %v1120_v8 }
 0x3c2   : > { %v1812_v54 = vpop.eup %1811  ;;  %1539 = vmatpush1.bf16.xpose.msra.mxu0 %v1538_v20  ;;  %1601 = vmatpush1.bf16.xpose.msra.mxu1 %v1538_v20 }
 0x3c3   : > { %v1123_v47 = vpop.xlane.xlu1 %1122  ;;  %v1228_v21 = vmul.f32 %v1812_v54, %v2429_v28  ;;  %v1227_v37 = vmul.f32 %v1812_v54, %v2427_v43  ;;  %v2811_v54 = vld [vmem:[#allocation7_spill] sm:$0xff] }
 0x3c4   : > { %1817 = vrcp.f32 %v1123_v47  ;;  %v2812_v47 = vld [vmem:[#allocation6_spill] sm:$0xff] }
 0x3c5   : > { %v1540_v13 = vpack.c.bf16 %v1228_v21, %v1226_v27  ;;  %v1542_v44 = vpack.c.bf16 %v1227_v37, %v1225_v26 }
 0x3c6   : > { %v1814_v41 = vpop.eup %1813 }
 0x3c7   : > { %v1126_v53 = vpop.xlane.xlu0 %1125  ;;  %1541 = vmatprep.subr.bf16.mxu0 %v1540_v13  ;;  %1586 = vmatprep.subr.bf16.mxu1 %v1540_v13  ;;  %v1230_v43 = vmul.f32 %v1814_v41, %v2437_v35  ;;  %v1229_v29 = vmul.f32 %v1814_v41, %v2435_v46 }
 0x3c8   : > { %1819 = vrcp.f32 %v1126_v53  ;;  %v2813_v53 = vld [vmem:[#allocation9_spill] sm:$0xff] }
 0x3ca   : > { %v1816_v1 = vpop.eup %1815  ;;  %1543 = vmatpush1.bf16.xpose.msra.mxu0 %v1542_v44  ;;  %1602 = vmatpush1.bf16.xpose.msra.mxu1 %v1542_v44 }
 0x3cb   : > { %v1129_v24 = vpop.xlane.xlu1 %1128  ;;  %v1232_v40 = vmul.f32 %v1816_v1, %v2445_v33  ;;  %v1231_v28 = vmul.f32 %v1816_v1, %v2443_v49 }
 0x3cc   : > { %239 = vperm.xlu0 %1655, %v215_v23   ;;  %1821 = vrcp.f32 %v1129_v24  ;;  %v2814_v23 = vld [vmem:[#allocation8_spill] sm:$0xff] }
 0x3cd   : > { %v1544_v6 = vpack.c.bf16 %v1232_v40, %v1230_v43  ;;  %v1546_v42 = vpack.c.bf16 %v1231_v28, %v1229_v29 }
 0x3ce   : > { %v1818_v48 = vpop.eup %1817 }
 0x3cf   : > { %v1132_v4 = vpop.xlane.xlu0 %1131  ;;  %1545 = vmatprep.subr.bf16.mxu0 %v1544_v6  ;;  %1587 = vmatprep.subr.bf16.mxu1 %v1544_v6  ;;  %v1234_v35 = vmul.f32 %v1818_v48, %v2453_v18  ;;  %v1233_v46 = vmul.f32 %v1818_v48, %v2451_v52  ;;  %v2816_v48 = vld [vmem:[#allocation11_spill] sm:$0xff] }
 0x3d0   : > { %1823 = vrcp.f32 %v1132_v4  ;;  %v2815_v4 = vld [vmem:[#allocation12_spill] sm:$0xff] }
 0x3d2   : > { %v1820_v51 = vpop.eup %1819  ;;  %1547 = vmatpush1.bf16.xpose.msra.mxu0 %v1546_v42  ;;  %1603 = vmatpush1.bf16.xpose.msra.mxu1 %v1546_v42 }
 0x3d3   : > { %v1135_v12 = vpop.xlane.xlu1 %1134  ;;  %v1236_v33 = vmul.f32 %v1820_v51, %v2461_v30  ;;  %v1235_v49 = vmul.f32 %v1820_v51, %v2459_v55  ;;  %v2817_v51 = vld [vmem:[#allocation10_spill] sm:$0xff] }
 0x3d4   : > { %1825 = vrcp.f32 %v1135_v12 }
 0x3d5   : > { %v1548_v14 = vpack.c.bf16 %v1236_v33, %v1234_v35  ;;  %v1550_v5 = vpack.c.bf16 %v1235_v49, %v1233_v46 }
 0x3d6   : > { %v1822_v0 = vpop.eup %1821 }
 0x3d7   : > { %v1138_v19 = vpop.xlane.xlu0 %1137  ;;  %1549 = vmatprep.subr.bf16.mxu0 %v1548_v14  ;;  %1588 = vmatprep.subr.bf16.mxu1 %v1548_v14  ;;  %v1238_v18 = vmul.f32 %v1822_v0, %v2469_v34  ;;  %v1237_v52 = vmul.f32 %v1822_v0, %v2467_v58 }
 0x3d8   : > { %1827 = vrcp.f32 %v1138_v19 }
 0x3da   : > { %v1824_v63 = vpop.eup %1823  ;;  %1551 = vmatpush1.bf16.xpose.msra.mxu0 %v1550_v5  ;;  %1604 = vmatpush1.bf16.xpose.msra.mxu1 %v1550_v5 }
 0x3db   : > { %v1141_v15 = vpop.xlane.xlu1 %1140  ;;  %v1240_v30 = vmul.f32 %v1824_v63, %v2477_v60  ;;  %v1239_v55 = vmul.f32 %v1824_v63, %v2475_v2  ;;  %v2819_v63 = vld [vmem:[#allocation16_spill] sm:$0xff] }
 0x3dc   : > { %1829 = vrcp.f32 %v1141_v15 }
 0x3dd   : > { %v1552_v50 = vpack.c.bf16 %v1240_v30, %v1238_v18  ;;  %v1554_v31 = vpack.c.bf16 %v1239_v55, %v1237_v52  ;;  %v2820_v18 = vld [vmem:[#allocation15_spill] sm:$0xff]  ;;  %v2821_v55 = vld [vmem:[#allocation13_spill] sm:$0xff] }
 0x3de   : > { %v1826_v20 = vpop.eup %1825 }
 0x3df   : > { %v1144_v38 = vpop.xlane.xlu0 %1143  ;;  %1553 = vmatprep.subr.bf16.mxu0 %v1552_v50  ;;  %1589 = vmatprep.subr.bf16.mxu1 %v1552_v50  ;;  %v1242_v34 = vmul.f32 %v1826_v20, %v2485_v39  ;;  %v1241_v58 = vmul.f32 %v1826_v20, %v2812_v47 }
 0x3e0   : > { %1831 = vrcp.f32 %v1144_v38  ;;  %v2822_v38 = vld [vmem:[#allocation18_spill] sm:$0xff] }
 0x3e2   : > { %v1828_v8 = vpop.eup %1827  ;;  %1555 = vmatpush1.bf16.xpose.msra.mxu0 %v1554_v31  ;;  %1605 = vmatpush1.bf16.xpose.msra.mxu1 %v1554_v31 }
 0x3e3   : > { %v1147_v57 = vpop.xlane.xlu1 %1146  ;;  %v1244_v60 = vmul.f32 %v1828_v8, %v2493_v32  ;;  %v1243_v2 = vmul.f32 %v1828_v8, %v2811_v54  ;;  %v2823_v54 = vld [vmem:[#allocation20_spill] sm:$0xff] }
 0x3e4   : > { %1833 = vrcp.f32 %v1147_v57 }
 0x3e5   : > { %v1556_v27 = vpack.c.bf16 %v1244_v60, %v1242_v34  ;;  %v1558_v21 = vpack.c.bf16 %v1243_v2, %v1241_v58  ;;  %v2824_v58 = vld [vmem:[#allocation19_spill] sm:$0xff] }
 0x3e6   : > { %v1830_v26 = vpop.eup %1829 }
 0x3e7   : > { %v1150_v37 = vpop.xlane.xlu0 %1149  ;;  %1557 = vmatprep.subr.bf16.mxu0 %v1556_v27  ;;  %1590 = vmatprep.subr.bf16.mxu1 %v1556_v27  ;;  %v1246_v39 = vmul.f32 %v1830_v26, %v2813_v53  ;;  %v1245_v1 = vmul.f32 %v1830_v26, %v2814_v23 }
 0x3e8   : > { %1835 = vrcp.f32 %v1150_v37 }
 0x3ea   : > { %v1832_v13 = vpop.eup %1831  ;;  %1559 = vmatpush1.bf16.xpose.msra.mxu0 %v1558_v21  ;;  %1606 = vmatpush1.bf16.xpose.msra.mxu1 %v1558_v21 }
 0x3eb   : > { %v1153_v44 = vpop.xlane.xlu1 %1152  ;;  %v1248_v32 = vmul.f32 %v1832_v13, %v2509_v45  ;;  %v1247_v41 = vmul.f32 %v1832_v13, %v2507_v36 }
 0x3ec   : > { %1837 = vrcp.f32 %v1153_v44 }
 0x3ed   : > { %v1560_v24 = vpack.c.bf16 %v1248_v32, %v1246_v39  ;;  %v1562_v43 = vpack.c.bf16 %v1247_v41, %v1245_v1  ;;  %v2825_v1 = vld [vmem:[#allocation17_spill] sm:$0xff] }
 0x3ee   : > { %v1834_v28 = vpop.eup %1833 }
 0x3ef   : > { %v1156_v40 = vpop.xlane.xlu0 %1155  ;;  %1561 = vmatprep.subr.bf16.mxu0 %v1560_v24  ;;  %1591 = vmatprep.subr.bf16.mxu1 %v1560_v24  ;;  %v1250_v42 = vmul.f32 %v1834_v28, %v2517_v7  ;;  %v1249_v12 = vmul.f32 %v1834_v28, %v2817_v51  ;;  %v2818_v7 = vld [vmem:[#allocation14_spill] sm:$0xff]  ;;  %v1851_v51 = vld [vmem:[%s2015_s10 + $0x8] sm:$0xff] }
 0x3f0   : > { %1839 = vrcp.f32 %v1156_v40  ;;  %v1355_v40 = vstv %s1354_s14 }
 0x3f2   : > { %v1836_v29 = vpop.eup %1835  ;;  %1563 = vmatpush1.bf16.xpose.msra.mxu0 %v1562_v43  ;;  %1607 = vmatpush1.bf16.xpose.msra.mxu1 %v1562_v43 }
 0x3f3   : > { %v1159_v6 = vpop.xlane.xlu1 %1158  ;;  %v1252_v45 = vmul.f32 %v1836_v29, %v2815_v4  ;;  %v1251_v36 = vmul.f32 %v1836_v29, %v2816_v48 }
 0x3f4   : > { %1841 = vrcp.f32 %v1159_v6 }
 0x3f5   : > { %v1564_v35 = vpack.c.bf16 %v1252_v45, %v1250_v42  ;;  %v1566_v33 = vpack.c.bf16 %v1251_v36, %v1249_v12  ;;  %v1849_v45 = vld [vmem:[%s2015_s10] sm:$0xff] }
 0x3f6   : > { %v1838_v46 = vpop.eup %1837 }
 0x3f7   : > { %1565 = vmatprep.subr.bf16.mxu0 %v1564_v35  ;;  %1592 = vmatprep.subr.bf16.mxu1 %v1564_v35  ;;  %v235_v49 = vpop.permute.xlu1 %234  ;;  %v1254_v0 = vmul.f32 %v1838_v46, %v2818_v7  ;;  %v1253_v52 = vmul.f32 %v1838_v46, %v2821_v55  ;;  %v1852_v35 = vld [vmem:[%s2015_s10 + $0x18] sm:$0xff] }
 0x3f8   : > { %v351_v14 = vadd.f32 %v2556_v62, %v235_v49  ;;  %v353_v5 = vadd.f32 %v2558_v11, %v235_v49 }
 0x3fa   : > { %v1840_v19 = vpop.eup %1839  ;;  %1567 = vmatpush1.bf16.xpose.msra.mxu0 %v1566_v33  ;;  %1608 = vmatpush1.bf16.xpose.msra.mxu1 %v1566_v33 }
 0x3fb   : > { %v1256_v15 = vmul.f32 %v1840_v19, %v2819_v63  ;;  %v1255_v30 = vmul.f32 %v1840_v19, %v2820_v18  ;;  %1335 = vmatprep.mubr.f32.mxu1 %v353_v5  ;;  %v1853_v19 = vld [vmem:[%s2015_s10 + $0x20] sm:$0xff] }
 0x3fd   : > { %v1568_v50 = vpack.c.bf16 %v1256_v15, %v1254_v0  ;;  %v1570_v31 = vpack.c.bf16 %v1255_v30, %v1253_v52  ;;  %v1854_v0 = vld [vmem:[%s2015_s10 + $0x28] sm:$0xff]  ;;  %v1855_v52 = vld [vmem:[%s2015_s10 + $0x30] sm:$0xff] }
 0x3fe   : > { %v1842_v34 = vpop.eup %1841 }
 0x3ff   : > { %1569 = vmatprep.subr.bf16.mxu0 %v1568_v50  ;;  %1593 = vmatprep.subr.bf16.mxu1 %v1568_v50  ;;  %v1258_v2 = vmul.f32 %v1842_v34, %v2823_v54  ;;  %v1257_v27 = vmul.f32 %v1842_v34, %v2824_v58 }
 0x402   : > { %1571 = vmatpush1.bf16.xpose.msra.mxu0 %v1570_v31  ;;  %1609 = vmatpush1.bf16.xpose.msra.mxu1 %v1570_v31  ;;  %v1856_v31 = vld [vmem:[%s2015_s10 + $0x38] sm:$0xff] }
 0x428   : > { %v1165_v62 = vpop.xlane.xlu1 %1164 }
 0x42c   : > { %v230_v11 = vpop.permute.xlu1 %229 }
 0x42d   : > { %v347_v20 = vadd.f32 %v2822_v38, %v230_v11  ;;  %v345_v24 = vadd.f32 %v2825_v1, %v230_v11 }
 0x42f   : > { %1329 = vmatprep.mubr.f32.mxu0 %v347_v20 }
 0x43b   : > { %v1162_v8 = vpop.xlane.xlu0 %1161 }
 0x43c   : > { %1843 = vrcp.f32 %v1162_v8 }
 0x43d   : > { %1845 = vrcp.f32 %v1165_v62 }
 0x443   : > { %v1168_v57 = vpop.xlane.xlu0 %1167 }
 0x444   : > { %1847 = vrcp.f32 %v1168_v57 }
 0x446   : > { %v1844_v60 = vpop.eup %1843 }
 0x447   : > { %v1260_v47 = vmul.f32 %v1844_v60, %v2587_v59  ;;  %v1259_v21 = vmul.f32 %v1844_v60, %v2585_v16  ;;  %v1846_v13 = vpop.eup %1845 }
 0x448   : > { %v1262_v53 = vmul.f32 %v1846_v13, %v2566_v9  ;;  %v1261_v32 = vmul.f32 %v1846_v13, %v2564_v17  ;;  %v245_v9 = vpop.permute.xlu1 %244 }
 0x449   : > { %v1572_v37 = vpack.c.bf16 %v1260_v47, %v1258_v2  ;;  %v1574_v26 = vpack.c.bf16 %v1259_v21, %v1257_v27 }
 0x44b   : > { %1573 = vmatprep.subr.bf16.mxu0 %v1572_v37  ;;  %1594 = vmatprep.subr.bf16.mxu1 %v1572_v37  ;;  %v240_v16 = vpop.permute.xlu0 %239 }
 0x44c   : > { %1575 = vmatpush1.bf16.xpose.msra.mxu0 %v1574_v26  ;;  %1610 = vmatpush1.bf16.xpose.msra.mxu1 %v1574_v26  ;;  %v359_v43 = vadd.f32 %v2600_v10, %v240_v16  ;;  %v357_v17 = vadd.f32 %v2598_v61, %v240_v16 }
 0x44e   : > { %v1848_v44 = vpop.eup %1847 }
 0x44f   : > { %v1264_v39 = vmul.f32 %v1848_v44, %v2608_v25  ;;  %v1263_v59 = vmul.f32 %v1848_v44, %v2606_v22  ;;  %v365_v22 = vadd.f32 %v2604_v56, %v245_v9  ;;  %v363_v25 = vadd.f32 %v2602_v3, %v245_v9  ;;  %v1850_v3 = vld [vmem:[%s2015_s10 + $0x10] sm:$0xff] }
 0x451   : > { %v1576_v41 = vpack.c.bf16 %v1264_v39, %v1262_v53  ;;  %v1578_v23 = vpack.c.bf16 %v1263_v59, %v1261_v32 }
 0x453   : > { %1577 = vmatprep.subr.bf16.mxu0 %v1576_v41  ;;  %1595 = vmatprep.subr.bf16.mxu1 %v1576_v41 }
 0x454   : > { %1579 = vmatpush1.bf16.xpose.msra.mxu0 %v1578_v23  ;;  %1611 = vmatpush1.bf16.xpose.msra.mxu1 %v1578_v23 }
 0x45b   : > { %1330 = vmatmul.mubr.f32.vlgmr.msra.gmra.mrb[12].mxu0 %v345_v24  ;;  %1336 = vmatmul.mubr.f32.vlgmr.msra.gmra.mrb[64].mxu1 %v351_v14 }
 0x45c   : > { %1341 = vmatprep.mubr.f32.mxu1 %v359_v43 }
 0x45f   : > { %1342 = vmatmul.mubr.f32.gmra.mrb[66].mxu1 %v357_v17 }
 0x460   : > { %1347 = vmatprep.mubr.f32.mxu1 %v365_v22 }
 0x463   : > { %1348 = vmatmul.mubr.f32.gmra.mrb[68].mxu1 %v363_v25 }
 0x52e   : > { %v1331_v10 = vpop.f32.mrb[12].mxu0  ;;  %v1337_v28 = vpop.f32.mrb[64].mxu1 }
 0x52f   : > { %v1356_v29 = vmul.f32 %v1355_v40, %v1331_v10  ;;  %v1358_v61 = vmul.f32 %v1355_v40, %v1337_v28  ;;  %v1333_v6 = vpop.f32.mrb[13].mxu0  ;;  %v1339_v56 = vpop.f32.mrb[65].mxu1 }
 0x530   : > { %v1357_v42 = vmul.f32 %v1355_v40, %v1333_v6  ;;  %v1359_v4 = vmul.f32 %v1355_v40, %v1339_v56 }
 0x531   : > { %v1364_v48 = vadd.f32 %v1849_v45, %v1356_v29  ;;  %v1366_v36 = vadd.f32 %v1850_v3, %v1358_v61 }
 0x532   : > { %v1365_v12 = vadd.f32 %v1851_v51, %v1357_v42  ;;  %v1367_v33 = vadd.f32 %v1852_v35, %v1359_v4  ;;  %v1343_v49 = vpop.f32.mrb[66].mxu1 }
 0x533   : > { %1372 = vst [vmem:[%s191_s21] sm:$0xff] %v1364_v48  ;;  %1374 = vst [vmem:[%s191_s21 + $0x10] sm:$0xff] %v1366_v36  ;;  %v1360_v46 = vmul.f32 %v1355_v40, %v1343_v49  ;;  %v1345_v14 = vpop.f32.mrb[67].mxu1 }
 0x534   : > { %1373 = vst [vmem:[%s191_s21 + $0x8] sm:$0xff] %v1365_v12  ;;  %1375 = vst [vmem:[%s191_s21 + $0x18] sm:$0xff] %v1367_v33  ;;  %v1361_v5 = vmul.f32 %v1355_v40, %v1345_v14 }
 0x535   : > { %v1368_v7 = vadd.f32 %v1853_v19, %v1360_v46 }
 0x536   : > { %v1369_v63 = vadd.f32 %v1854_v0, %v1361_v5  ;;  %v1349_v15 = vpop.f32.mrb[68].mxu1 }
 0x537   : > { %1376 = vst [vmem:[%s191_s21 + $0x20] sm:$0xff] %v1368_v7  ;;  %v1362_v18 = vmul.f32 %v1355_v40, %v1349_v15  ;;  %v1351_v30 = vpop.f32.mrb[69].mxu1 }
 0x538   : > { %1377 = vst [vmem:[%s191_s21 + $0x28] sm:$0xff] %v1369_v63  ;;  %v1363_v55 = vmul.f32 %v1355_v40, %v1351_v30 }
 0x539   : > { %v1370_v50 = vadd.f32 %v1855_v52, %v1362_v18 }
 0x53a   : > { %v1371_v62 = vadd.f32 %v1856_v31, %v1363_v55 }
 0x53b   : > { %1378 = vst [vmem:[%s191_s21 + $0x30] sm:$0xff] %v1370_v50 }
 0x53c   : > { %1379 = vst [vmem:[%s191_s21 + $0x38] sm:$0xff] %v1371_v62 }
 0x53d   : > { %1870 = shalt.err (!%p1867_p3)
}
 0x53e   : > { %s1871_s10 = scalar_lea.hbm %s2685_s30, 1024  ;;  %s1875_s12 = scalar_lea.hbm %s2737_s4, 2048 }
 0x53f   : > { %p1872_p4 = scmp.ne.s32.totalorder %s2685_s30, %s1871_s10  ;;  %p1876_p9 = scmp.lt.u32.totalorder %s2685_s30, %s2737_s4 }
 0x540   : > { %p1877_p10 = scmp.lt.u32.totalorder %s1875_s12, %s1871_s10  ;;  %p1879_p12 = scmp.lt.u32.totalorder %s1871_s10, %s2685_s30 }
 0x541   : > { %p1873_p7 = pnand %p1872_p4, %p1992_p5 }
 0x542   : > { %p1878_p11 = por %p1877_p10, %p1876_p9 }
 0x543   : > { %p1874_p8 = pneg %p1873_p7 }
 0x544   : > { %p1880_p13 = por %p1879_p12, %p1878_p11 }
 0x546   : > { %p1881_p0 = pnand %p1880_p13, %p1874_p8 }
 0x548   : > { %1884 = shalt.err (!%p1881_p0)
}
 0x549   : > { %s1924_s15 = smov 256   ;;  %s1925_s16 = smov 16  }
 0x54a   : > { %1612 = dma.vmem_to_hbm [thread:$0]  (%p1992_p5), %s2687_s24, 1024, %s2685_s30, %s2692_s3, %s1924_s15, %s1924_s15, %s1925_s16  }
 0x54b PF: > { %p1618_p1 = scmp.ge.s32.totalorder %s1919_s20, 2  ;;  %s1409_s21 = sand.u32 1, %s1907_s17  }
 0x54c   : > { %s1410_s23 = scalar_lea.sflag [#allocation4], %s1409_s21 }
 0x54d   : > { %p1615_p2 = pnand %p1618_p1, %p1996_p6 }
 0x54f   : > { %1902 = dma.done.wait (!%p1615_p2), %s1410_s23, 1024  }
 0x550   : > { %1904 = vsyncadd (!%p1615_p2), %s1410_s23, 4294966272  ;;  %p15_p3 = scmp.ge.s32.totalorder %s1979_s22, 4   ;;  %s2826_s17 = smov %s1911_s18 }
 0x551   : > { %s2827_s18 = smov %s1915_s19  ;;  %s2828_s19 = smov %s1990_s25 }
 0x552   : > { %s2829_s20 = smov %s1979_s22  ;;  %17 = sbr.rel (!%p15_p3) target bundleno = 5 (0x5), region = 71 }
 0x559   :  { %1415 = vsyncpa [#allocation4], 1 }
 0x55a   :  { %1417 = vsyncpa [#allocation4 + $0x1], 1 }

</bundles_post_ra>
